<compile_context>
chip_gen: v7x
topology: tpu7x:2x2x1
jax: 0.10.0
libtpu: 0.0.40
codegen_flags: <defaults>
</compile_context>

<pallas_src>
import math
import jax
import jax.numpy as jnp
from jax import lax
from jax.experimental import pallas as pl
from jax.experimental.pallas import tpu as pltpu


# ------------------------------------------------------------------ helpers --

def _erf_f32(x):
    # XLA's float32 erf rational approximation (what torch.erf / lax.erf
    # compile to on TPU for f32).
    alpha = (0.00022905065861350646, 0.0034082910107109506, 0.050955695062380861,
             0.18520832239976145, 1.128379143519084)
    beta = (-1.1791602954361697e-7, 0.000023547966471313185, 0.0010179625278914885,
            0.014070470171167667, 0.11098505178285362, 0.49746925110067538, 1.0)
    lim = 3.832506856900711
    x = jnp.clip(x, -lim, lim)
    x2 = x * x
    p = jnp.float32(alpha[0])
    for c in alpha[1:]:
        p = p * x2 + jnp.float32(c)
    q = jnp.float32(beta[0])
    for c in beta[1:]:
        q = q * x2 + jnp.float32(c)
    return (x * p) / q


def _gelu(x):
    # gelu(x) = x * 0.5 * (1 + erf(x / sqrt(2)))   (exact BERT gelu)
    return x * 0.5 * (1.0 + _erf_f32(x * jnp.float32(1.0 / math.sqrt(2.0))))


_VMEM = lambda: pl.BlockSpec(memory_space=pltpu.MemorySpace.VMEM)


# ------------------------------------------------------------------- kernel --

def fused_qq_kernel(
    # MLM head + CE inputs
    txt_ref, mlm_w1_ref, mlm_b1_ref, mlm_g_ref, mlm_be_ref, mlm_w2_ref,
    mlm_b2_ref, lm_label_ref,
    # MFM head + NCE inputs
    vid_ref, mfm_w1_ref, mfm_b1_ref, mfm_g_ref, mfm_be_ref, mfm_w2_ref,
    mfm_b2_ref, vin_ref, mrow_ref, mcol_ref, sel_ref,
    # ITM inputs
    cls_ref, itm_w_ref, itm_b_ref, match_ref,
    # outputs
    pred_ref, losses_ref,
):
    f32 = jnp.float32
    bf16 = jnp.bfloat16

    def head(x_b, w1_ref, b1_ref, g_ref, be_ref, w2_ref, b2_ref):
        """dense(bf16 MXU) -> gelu -> LayerNorm (f32) -> decoder(bf16 MXU)+bias."""
        h = jnp.dot(x_b, w1_ref[...], preferred_element_type=f32) + b1_ref[...]
        h = _gelu(h)
        mu = jnp.mean(h, axis=-1, keepdims=True)
        var = jnp.mean((h - mu) * (h - mu), axis=-1, keepdims=True)
        h = (h - mu) * lax.rsqrt(var + f32(1e-12)) * g_ref[...] + be_ref[...]
        return jnp.dot(h.astype(bf16), w2_ref[...],
                       preferred_element_type=f32) + b2_ref[...]

    # ------------------------------------------------ MLM: head + CE(mean) --
    logits = head(txt_ref[...], mlm_w1_ref, mlm_b1_ref, mlm_g_ref, mlm_be_ref,
                  mlm_w2_ref, mlm_b2_ref)                        # (Nt, V) f32
    labels = lm_label_ref[...]                                    # (Nt, 1) i32
    mx = jnp.max(logits, axis=-1, keepdims=True)
    lse = mx + jnp.log(jnp.sum(jnp.exp(logits - mx), axis=-1, keepdims=True))
    cols = lax.broadcasted_iota(jnp.int32, logits.shape, 1)
    picked = jnp.sum(jnp.where(cols == labels, logits, 0.0), axis=-1,
                     keepdims=True)
    valid = (labels != -100).astype(f32)
    nll_num = jnp.sum((lse - picked) * valid, axis=0, keepdims=True)   # (1,1)
    nll_den = jnp.maximum(jnp.sum(valid, axis=0, keepdims=True), 1.0)
    mlm_loss = nll_num * pl.reciprocal(nll_den, approx=True)

    # ----------------------------------------- MFM: head + NCE (masked mean) --
    vm_out = head(vid_ref[...], mfm_w1_ref, mfm_b1_ref, mfm_g_ref, mfm_be_ref,
                  mfm_w2_ref, mfm_b2_ref)                        # (Nv, 768) f32
    vm_b = vm_out.astype(bf16)
    vin_b = vin_ref[...]                                          # (Nv, 768) bf16
    # (Nv,768) x (Nv,768)^T -> (Nv,Nv), contracting last dims (no transpose op)
    nce_logits = lax.dot_general(vm_b, vin_b, (((1,), (1,)), ((), ())),
                                 preferred_element_type=f32)
    mrow = mrow_ref[...]                                          # (Nv, 1)
    mcol = mcol_ref[...]                                          # (1, Nv)
    # -100 additive mask kept to match the PyTorch reference exactly.
    masked = nce_logits + (1.0 - mrow * mcol) * f32(-100.0)
    mmx = jnp.max(masked, axis=-1, keepdims=True)
    mlse = mmx + jnp.log(jnp.sum(jnp.exp(masked - mmx), axis=-1, keepdims=True))
    # diagonal of `masked` == rowwise dot(vm, vin) + diagonal mask term
    diag = (jnp.sum(vm_b.astype(f32) * vin_b.astype(f32), axis=-1, keepdims=True)
            + (1.0 - mrow * mrow) * f32(-100.0))
    nce = mlse - diag                                             # (Nv, 1)
    sel = sel_ref[...]                                            # (Nv, 1)
    mfm_num = jnp.sum(nce * sel, axis=0, keepdims=True)
    mfm_den = jnp.maximum(jnp.sum(sel, axis=0, keepdims=True), 1.0)
    mfm_loss = mfm_num * pl.reciprocal(mfm_den, approx=True)

    # ----------------------------- ITM: Linear(H->1) via VPU + BCE-with-logits --
    cls = cls_ref[...]                                            # (B, H) f32
    x = (jnp.sum(cls * itm_w_ref[...], axis=-1, keepdims=True)
         + itm_b_ref[...])                                        # (B, 1)
    pred_ref[...] = x
    y = match_ref[...]
    bce = jnp.maximum(x, 0.0) - x * y + jnp.log(1.0 + jnp.exp(-jnp.abs(x)))
    itm_loss = jnp.sum(bce, axis=0, keepdims=True) * f32(1.0 / x.shape[0])

    # ------------------------------------------------- combine + emit scalars --
    total = mlm_loss * f32(0.5) + mfm_loss * f32(1.0 / 3.0) + itm_loss * f32(2.0)
    lane = lax.broadcasted_iota(jnp.int32, (1, 4), 1)
    losses_ref[...] = (jnp.where(lane == 0, total, 0.0)
                       + jnp.where(lane == 1, itm_loss, 0.0)
                       + jnp.where(lane == 2, mfm_loss, 0.0)
                       + jnp.where(lane == 3, mlm_loss, 0.0))


# ------------------------------------------------------------------ forward --

def qq_uni_forward(p, video_feature, video_mask, text_input_ids, text_mask,
                   lm_label, video_label_sel, match_label):
    del text_mask  # only consumed by the (CPU-side) label generation stand-in
    B, T, FEAT = video_feature.shape
    H = p["Wv"].shape[1]
    bf16 = jnp.bfloat16

    vm_input = video_feature  # original (pre-mask) features are the MFM targets

    # TODO(synk): Clip_Vit_Cross_Model backbone replaced by a deterministic
    #             linear/tanh + embedding stand-in.
    video_features = jnp.tanh(video_feature.astype(jnp.float32) @ p["Wv"] + p["bv"])  # (B,T,H)
    image_cls = jnp.mean(video_features, axis=1)                                       # (B,H)
    text_embeds = p["Emb"][text_input_ids[:, 1:]]                                      # (B,L-1,H)

    vmf = video_mask.astype(jnp.float32).reshape(-1)

    pred, losses = pl.pallas_call(
        fused_qq_kernel,
        out_shape=(jax.ShapeDtypeStruct((B, 1), jnp.float32),
                   jax.ShapeDtypeStruct((1, 4), jnp.float32)),
        in_specs=[_VMEM() for _ in range(23)],
        out_specs=(_VMEM(), _VMEM()),
    )(
        # MLM head (BertOnlyMLMHead stand-in) + CE
        text_embeds.reshape(-1, H).astype(bf16),
        p["mlm_w1"].astype(bf16), p["mlm_b1"].reshape(1, -1),
        p["mlm_g"].reshape(1, -1), p["mlm_be"].reshape(1, -1),
        p["mlm_w2"].astype(bf16), p["mlm_b2"].reshape(1, -1),
        lm_label.reshape(-1, 1),
        # MFM head (VisualOnlyMLMHead) + NCE
        video_features.reshape(-1, H).astype(bf16),
        p["mfm_w1"].astype(bf16), p["mfm_b1"].reshape(1, -1),
        p["mfm_g"].reshape(1, -1), p["mfm_be"].reshape(1, -1),
        p["mfm_w2"].astype(bf16), p["mfm_b2"].reshape(1, -1),
        vm_input.reshape(-1, FEAT).astype(bf16),          # (N, 768), no transpose
        vmf.reshape(-1, 1), vmf.reshape(1, -1),
        video_label_sel.astype(jnp.float32).reshape(-1, 1),
        # ITM
        image_cls.astype(jnp.float32),
        p["itm_w"].reshape(1, -1),                        # (H,1) -> (1,H) row
        p["itm_b"].reshape(1, 1),
        match_label.reshape(-1, 1).astype(jnp.float32),
    )

    loss = losses[0, 0]
    itm_loss = losses[0, 1]
    masked_vm_loss = losses[0, 2]
    masked_lm_loss = losses[0, 3]
    return pred, loss, itm_loss, masked_vm_loss, masked_lm_loss


# --------------------------------------------------------------------- main --

if __name__ == "__main__":
    B, T, FEAT, H, L, VOCAB = 2, 8, 768, 128, 9, 512

    key = jax.random.PRNGKey(0)
    ks = jax.random.split(key, 24)
    w = lambda k, shp: (0.02 * jax.random.normal(k, shp)).astype(jnp.float32)

    params = {
        # backbone stand-in
        "Wv": w(ks[0], (FEAT, H)), "bv": jnp.zeros((H,), jnp.float32),
        "Emb": w(ks[1], (VOCAB, H)),
        # VisualOnlyMLMHead (hidden -> hidden -> 768), mfm_bias = zeros as in module
        "mfm_w1": w(ks[2], (H, H)), "mfm_b1": jnp.zeros((H,), jnp.float32),
        "mfm_g": jnp.ones((H,), jnp.float32), "mfm_be": jnp.zeros((H,), jnp.float32),
        "mfm_w2": w(ks[3], (H, FEAT)), "mfm_b2": jnp.zeros((FEAT,), jnp.float32),
        # BertOnlyMLMHead stand-in (hidden -> hidden -> vocab)
        "mlm_w1": w(ks[4], (H, H)), "mlm_b1": jnp.zeros((H,), jnp.float32),
        "mlm_g": jnp.ones((H,), jnp.float32), "mlm_be": jnp.zeros((H,), jnp.float32),
        "mlm_w2": w(ks[5], (H, VOCAB)), "mlm_b2": jnp.zeros((VOCAB,), jnp.float32),
        # ITM head
        "itm_w": w(ks[6], (H, 1)), "itm_b": jnp.zeros((1,), jnp.float32),
    }

    # inputs
    video_feature = jax.random.normal(ks[7], (B, T, FEAT)).astype(jnp.float32)
    video_mask = jnp.ones((B, T), jnp.float32).at[1, -1].set(0.0)
    text_input_ids = jax.random.randint(ks[8], (B, L), 0, VOCAB, dtype=jnp.int32)
    text_mask = jnp.ones((B, L), jnp.float32).at[1, -1].set(0.0)

    # TODO(synk): deterministic stand-ins for MaskLM / MaskVideo / ShuffleVideo
    #             label generation (the originals are stochastic CPU-side ops).
    lm_pos = jax.random.bernoulli(ks[9], 0.15, (B, L - 1)) & (text_mask[:, 1:] > 0)
    lm_pos = lm_pos.at[0, 0].set(True)
    lm_label = jnp.where(lm_pos, text_input_ids[:, 1:], -100).astype(jnp.int32)
    video_label_sel = (jax.random.bernoulli(ks[10], 0.3, (B, T)) & (video_mask > 0)).at[0, 0].set(True)
    match_label = jax.random.bernoulli(ks[11], 0.5, (B,)).astype(jnp.float32)

    fwd = jax.jit(qq_uni_forward)
    pred, loss, itm_loss, masked_vm_loss, masked_lm_loss = fwd(
        params, video_feature, video_mask, text_input_ids, text_mask,
        lm_label, video_label_sel, match_label)
    jax.block_until_ready((pred, loss, itm_loss, masked_vm_loss, masked_lm_loss))
    print("KERNEL_OK")
</pallas_src>

<mosaic_0001>
module attributes {stable_mosaic.version = 11 : i64} {
  func.func @fused_qq_kernel(%arg0: memref<16x128xbf16, #tpu.memory_space<vmem>>, %arg1: memref<128x128xbf16, #tpu.memory_space<vmem>>, %arg2: memref<1x128xf32, #tpu.memory_space<vmem>>, %arg3: memref<1x128xf32, #tpu.memory_space<vmem>>, %arg4: memref<1x128xf32, #tpu.memory_space<vmem>>, %arg5: memref<128x512xbf16, #tpu.memory_space<vmem>>, %arg6: memref<1x512xf32, #tpu.memory_space<vmem>>, %arg7: memref<16x1xi32, #tpu.memory_space<vmem>>, %arg8: memref<16x128xbf16, #tpu.memory_space<vmem>>, %arg9: memref<128x128xbf16, #tpu.memory_space<vmem>>, %arg10: memref<1x128xf32, #tpu.memory_space<vmem>>, %arg11: memref<1x128xf32, #tpu.memory_space<vmem>>, %arg12: memref<1x128xf32, #tpu.memory_space<vmem>>, %arg13: memref<128x768xbf16, #tpu.memory_space<vmem>>, %arg14: memref<1x768xf32, #tpu.memory_space<vmem>>, %arg15: memref<16x768xbf16, #tpu.memory_space<vmem>>, %arg16: memref<16x1xf32, #tpu.memory_space<vmem>>, %arg17: memref<1x16xf32, #tpu.memory_space<vmem>>, %arg18: memref<16x1xf32, #tpu.memory_space<vmem>>, %arg19: memref<2x128xf32, #tpu.memory_space<vmem>>, %arg20: memref<1x128xf32, #tpu.memory_space<vmem>>, %arg21: memref<1x1xf32, #tpu.memory_space<vmem>>, %arg22: memref<2x1xf32, #tpu.memory_space<vmem>>, %arg23: memref<2x1xf32, #tpu.memory_space<vmem>>, %arg24: memref<1x4xf32, #tpu.memory_space<vmem>>) attributes {dimension_semantics = [], scalar_prefetch = 0 : i64, scratch_operands = 0 : i64, tpu.core_type = #tpu.core_type<tc>} {
    %c0 = arith.constant 0 : index
    %c0_0 = arith.constant 0 : index
    %0 = vector.load %arg0[%c0, %c0_0] : memref<16x128xbf16, #tpu.memory_space<vmem>>, vector<16x128xbf16>
    %c0_1 = arith.constant 0 : index
    %c0_2 = arith.constant 0 : index
    %1 = vector.load %arg1[%c0_1, %c0_2] : memref<128x128xbf16, #tpu.memory_space<vmem>>, vector<128x128xbf16>
    %cst = arith.constant dense<0.000000e+00> : vector<16x128xf32>
    %2 = tpu.matmul %0, %1, %cst {dimension_numbers = #tpu.dot_dimension_numbers<[1], [0], [0], [1], [0, 0, 1, 1], [], []>} : vector<16x128xbf16>, vector<128x128xbf16>, vector<16x128xf32> -> vector<16x128xf32>
    %c0_3 = arith.constant 0 : index
    %c0_4 = arith.constant 0 : index
    %3 = vector.load %arg2[%c0_3, %c0_4] : memref<1x128xf32, #tpu.memory_space<vmem>>, vector<1x128xf32>
    %4 = vector.broadcast %3 : vector<1x128xf32> to vector<16x128xf32>
    %5 = arith.addf %2, %4 : vector<16x128xf32>
    %cst_5 = arith.constant 5.000000e-01 : f32
    %6 = vector.broadcast %cst_5 : f32 to vector<16x128xf32>
    %7 = arith.mulf %5, %6 : vector<16x128xf32>
    %cst_6 = arith.constant 0.707106769 : f32
    %8 = vector.broadcast %cst_6 : f32 to vector<16x128xf32>
    %9 = arith.mulf %5, %8 : vector<16x128xf32>
    %cst_7 = arith.constant -3.8325069 : f32
    %cst_8 = arith.constant 3.8325069 : f32
    %10 = vector.broadcast %cst_7 : f32 to vector<16x128xf32>
    %11 = arith.maximumf %10, %9 : vector<16x128xf32>
    %12 = vector.broadcast %cst_8 : f32 to vector<16x128xf32>
    %13 = arith.minimumf %12, %11 : vector<16x128xf32>
    %14 = arith.mulf %13, %13 : vector<16x128xf32>
    %cst_9 = arith.constant 2.29050653E-4 : f32
    %15 = vector.broadcast %cst_9 : f32 to vector<16x128xf32>
    %16 = arith.mulf %15, %14 : vector<16x128xf32>
    %cst_10 = arith.constant 0.00340829091 : f32
    %17 = vector.broadcast %cst_10 : f32 to vector<16x128xf32>
    %18 = arith.addf %16, %17 : vector<16x128xf32>
    %19 = arith.mulf %18, %14 : vector<16x128xf32>
    %cst_11 = arith.constant 0.0509556942 : f32
    %20 = vector.broadcast %cst_11 : f32 to vector<16x128xf32>
    %21 = arith.addf %19, %20 : vector<16x128xf32>
    %22 = arith.mulf %21, %14 : vector<16x128xf32>
    %cst_12 = arith.constant 0.185208321 : f32
    %23 = vector.broadcast %cst_12 : f32 to vector<16x128xf32>
    %24 = arith.addf %22, %23 : vector<16x128xf32>
    %25 = arith.mulf %24, %14 : vector<16x128xf32>
    %cst_13 = arith.constant 1.12837911 : f32
    %26 = vector.broadcast %cst_13 : f32 to vector<16x128xf32>
    %27 = arith.addf %25, %26 : vector<16x128xf32>
    %cst_14 = arith.constant -1.17916031E-7 : f32
    %28 = vector.broadcast %cst_14 : f32 to vector<16x128xf32>
    %29 = arith.mulf %28, %14 : vector<16x128xf32>
    %cst_15 = arith.constant 2.35479656E-5 : f32
    %30 = vector.broadcast %cst_15 : f32 to vector<16x128xf32>
    %31 = arith.addf %29, %30 : vector<16x128xf32>
    %32 = arith.mulf %31, %14 : vector<16x128xf32>
    %cst_16 = arith.constant 0.00101796258 : f32
    %33 = vector.broadcast %cst_16 : f32 to vector<16x128xf32>
    %34 = arith.addf %32, %33 : vector<16x128xf32>
    %35 = arith.mulf %34, %14 : vector<16x128xf32>
    %cst_17 = arith.constant 0.0140704699 : f32
    %36 = vector.broadcast %cst_17 : f32 to vector<16x128xf32>
    %37 = arith.addf %35, %36 : vector<16x128xf32>
    %38 = arith.mulf %37, %14 : vector<16x128xf32>
    %cst_18 = arith.constant 0.110985048 : f32
    %39 = vector.broadcast %cst_18 : f32 to vector<16x128xf32>
    %40 = arith.addf %38, %39 : vector<16x128xf32>
    %41 = arith.mulf %40, %14 : vector<16x128xf32>
    %cst_19 = arith.constant 0.497469246 : f32
    %42 = vector.broadcast %cst_19 : f32 to vector<16x128xf32>
    %43 = arith.addf %41, %42 : vector<16x128xf32>
    %44 = arith.mulf %43, %14 : vector<16x128xf32>
    %cst_20 = arith.constant 1.000000e+00 : f32
    %45 = vector.broadcast %cst_20 : f32 to vector<16x128xf32>
    %46 = arith.addf %44, %45 : vector<16x128xf32>
    %47 = arith.mulf %13, %27 : vector<16x128xf32>
    %48 = arith.divf %47, %46 : vector<16x128xf32>
    %cst_21 = arith.constant 1.000000e+00 : f32
    %49 = vector.broadcast %cst_21 : f32 to vector<16x128xf32>
    %50 = arith.addf %49, %48 : vector<16x128xf32>
    %51 = arith.mulf %7, %50 : vector<16x128xf32>
    %cst_22 = arith.constant dense<0.000000e+00> : vector<16xf32>
    %52 = vector.multi_reduction <add>, %51, %cst_22 [1] : vector<16x128xf32> to vector<16xf32>
    %53 = vector.shape_cast %52 : vector<16xf32> to vector<16x1xf32>
    %cst_23 = arith.constant 1.280000e+02 : f32
    %54 = vector.broadcast %cst_23 : f32 to vector<16x1xf32>
    %55 = arith.divf %53, %54 : vector<16x1xf32>
    %56 = vector.broadcast %55 : vector<16x1xf32> to vector<16x128xf32>
    %57 = arith.subf %51, %56 : vector<16x128xf32>
    %58 = vector.broadcast %55 : vector<16x1xf32> to vector<16x128xf32>
    %59 = arith.subf %51, %58 : vector<16x128xf32>
    %60 = arith.mulf %57, %59 : vector<16x128xf32>
    %cst_24 = arith.constant dense<0.000000e+00> : vector<16xf32>
    %61 = vector.multi_reduction <add>, %60, %cst_24 [1] : vector<16x128xf32> to vector<16xf32>
    %62 = vector.shape_cast %61 : vector<16xf32> to vector<16x1xf32>
    %cst_25 = arith.constant 1.280000e+02 : f32
    %63 = vector.broadcast %cst_25 : f32 to vector<16x1xf32>
    %64 = arith.divf %62, %63 : vector<16x1xf32>
    %65 = vector.broadcast %55 : vector<16x1xf32> to vector<16x128xf32>
    %66 = arith.subf %51, %65 : vector<16x128xf32>
    %cst_26 = arith.constant 9.99999996E-13 : f32
    %67 = vector.broadcast %cst_26 : f32 to vector<16x1xf32>
    %68 = arith.addf %64, %67 : vector<16x1xf32>
    %69 = math.rsqrt %68 : vector<16x1xf32>
    %70 = vector.broadcast %69 : vector<16x1xf32> to vector<16x128xf32>
    %71 = arith.mulf %66, %70 : vector<16x128xf32>
    %c0_27 = arith.constant 0 : index
    %c0_28 = arith.constant 0 : index
    %72 = vector.load %arg3[%c0_27, %c0_28] : memref<1x128xf32, #tpu.memory_space<vmem>>, vector<1x128xf32>
    %73 = vector.broadcast %72 : vector<1x128xf32> to vector<16x128xf32>
    %74 = arith.mulf %71, %73 : vector<16x128xf32>
    %c0_29 = arith.constant 0 : index
    %c0_30 = arith.constant 0 : index
    %75 = vector.load %arg4[%c0_29, %c0_30] : memref<1x128xf32, #tpu.memory_space<vmem>>, vector<1x128xf32>
    %76 = vector.broadcast %75 : vector<1x128xf32> to vector<16x128xf32>
    %77 = arith.addf %74, %76 : vector<16x128xf32>
    %78 = arith.truncf %77 : vector<16x128xf32> to vector<16x128xbf16>
    %c0_31 = arith.constant 0 : index
    %c0_32 = arith.constant 0 : index
    %79 = vector.load %arg5[%c0_31, %c0_32] : memref<128x512xbf16, #tpu.memory_space<vmem>>, vector<128x512xbf16>
    %cst_33 = arith.constant dense<0.000000e+00> : vector<16x512xf32>
    %80 = tpu.matmul %78, %79, %cst_33 {dimension_numbers = #tpu.dot_dimension_numbers<[1], [0], [0], [1], [0, 0, 1, 1], [], []>} : vector<16x128xbf16>, vector<128x512xbf16>, vector<16x512xf32> -> vector<16x512xf32>
    %c0_34 = arith.constant 0 : index
    %c0_35 = arith.constant 0 : index
    %81 = vector.load %arg6[%c0_34, %c0_35] : memref<1x512xf32, #tpu.memory_space<vmem>>, vector<1x512xf32>
    %82 = vector.broadcast %81 : vector<1x512xf32> to vector<16x512xf32>
    %83 = arith.addf %80, %82 : vector<16x512xf32>
    %c0_36 = arith.constant 0 : index
    %c0_37 = arith.constant 0 : index
    %84 = vector.load %arg7[%c0_36, %c0_37] : memref<16x1xi32, #tpu.memory_space<vmem>>, vector<16x1xi32>
    %cst_38 = arith.constant dense<0xFF800000> : vector<16xf32>
    %85 = vector.multi_reduction <maximumf>, %83, %cst_38 [1] : vector<16x512xf32> to vector<16xf32>
    %86 = vector.shape_cast %85 : vector<16xf32> to vector<16x1xf32>
    %87 = vector.broadcast %86 : vector<16x1xf32> to vector<16x512xf32>
    %88 = arith.subf %83, %87 : vector<16x512xf32>
    %89 = math.exp %88 : vector<16x512xf32>
    %cst_39 = arith.constant dense<0.000000e+00> : vector<16xf32>
    %90 = vector.multi_reduction <add>, %89, %cst_39 [1] : vector<16x512xf32> to vector<16xf32>
    %91 = vector.shape_cast %90 : vector<16xf32> to vector<16x1xf32>
    %92 = math.log %91 : vector<16x1xf32>
    %93 = arith.addf %86, %92 : vector<16x1xf32>
    %94 = tpu.iota {dimensions = array<i32: 1>} : vector<16x512xi32>
    %95 = vector.broadcast %84 : vector<16x1xi32> to vector<16x512xi32>
    %96 = arith.cmpi eq, %94, %95 : vector<16x512xi32>
    %cst_40 = arith.constant 0.000000e+00 : f32
    %97 = vector.broadcast %cst_40 : f32 to vector<16x512xf32>
    %98 = arith.select %96, %83, %97 : vector<16x512xi1>, vector<16x512xf32>
    %cst_41 = arith.constant dense<0.000000e+00> : vector<16xf32>
    %99 = vector.multi_reduction <add>, %98, %cst_41 [1] : vector<16x512xf32> to vector<16xf32>
    %100 = vector.shape_cast %99 : vector<16xf32> to vector<16x1xf32>
    %c-100_i32 = arith.constant -100 : i32
    %101 = vector.broadcast %c-100_i32 : i32 to vector<16x1xi32>
    %102 = arith.cmpi ne, %84, %101 : vector<16x1xi32>
    %103 = arith.extui %102 : vector<16x1xi1> to vector<16x1xi32>
    %104 = arith.sitofp %103 : vector<16x1xi32> to vector<16x1xf32>
    %105 = arith.subf %93, %100 : vector<16x1xf32>
    %106 = arith.mulf %105, %104 : vector<16x1xf32>
    %cst_42 = arith.constant dense<0.000000e+00> : vector<1xf32>
    %107 = vector.multi_reduction <add>, %106, %cst_42 [0] : vector<16x1xf32> to vector<1xf32>
    %108 = vector.shape_cast %107 : vector<1xf32> to vector<1x1xf32>
    %cst_43 = arith.constant dense<0.000000e+00> : vector<1xf32>
    %109 = vector.multi_reduction <add>, %104, %cst_43 [0] : vector<16x1xf32> to vector<1xf32>
    %110 = vector.shape_cast %109 : vector<1xf32> to vector<1x1xf32>
    %cst_44 = arith.constant 1.000000e+00 : f32
    %111 = vector.broadcast %cst_44 : f32 to vector<1x1xf32>
    %112 = arith.maximumf %110, %111 : vector<1x1xf32>
    %113 = tpu.reciprocal %112 {approx = true} : vector<1x1xf32> -> vector<1x1xf32>
    %114 = arith.mulf %108, %113 : vector<1x1xf32>
    %c0_45 = arith.constant 0 : index
    %c0_46 = arith.constant 0 : index
    %115 = vector.load %arg8[%c0_45, %c0_46] : memref<16x128xbf16, #tpu.memory_space<vmem>>, vector<16x128xbf16>
    %c0_47 = arith.constant 0 : index
    %c0_48 = arith.constant 0 : index
    %116 = vector.load %arg9[%c0_47, %c0_48] : memref<128x128xbf16, #tpu.memory_space<vmem>>, vector<128x128xbf16>
    %cst_49 = arith.constant dense<0.000000e+00> : vector<16x128xf32>
    %117 = tpu.matmul %115, %116, %cst_49 {dimension_numbers = #tpu.dot_dimension_numbers<[1], [0], [0], [1], [0, 0, 1, 1], [], []>} : vector<16x128xbf16>, vector<128x128xbf16>, vector<16x128xf32> -> vector<16x128xf32>
    %c0_50 = arith.constant 0 : index
    %c0_51 = arith.constant 0 : index
    %118 = vector.load %arg10[%c0_50, %c0_51] : memref<1x128xf32, #tpu.memory_space<vmem>>, vector<1x128xf32>
    %119 = vector.broadcast %118 : vector<1x128xf32> to vector<16x128xf32>
    %120 = arith.addf %117, %119 : vector<16x128xf32>
    %cst_52 = arith.constant 5.000000e-01 : f32
    %121 = vector.broadcast %cst_52 : f32 to vector<16x128xf32>
    %122 = arith.mulf %120, %121 : vector<16x128xf32>
    %cst_53 = arith.constant 0.707106769 : f32
    %123 = vector.broadcast %cst_53 : f32 to vector<16x128xf32>
    %124 = arith.mulf %120, %123 : vector<16x128xf32>
    %cst_54 = arith.constant -3.8325069 : f32
    %cst_55 = arith.constant 3.8325069 : f32
    %125 = vector.broadcast %cst_54 : f32 to vector<16x128xf32>
    %126 = arith.maximumf %125, %124 : vector<16x128xf32>
    %127 = vector.broadcast %cst_55 : f32 to vector<16x128xf32>
    %128 = arith.minimumf %127, %126 : vector<16x128xf32>
    %129 = arith.mulf %128, %128 : vector<16x128xf32>
    %cst_56 = arith.constant 2.29050653E-4 : f32
    %130 = vector.broadcast %cst_56 : f32 to vector<16x128xf32>
    %131 = arith.mulf %130, %129 : vector<16x128xf32>
    %cst_57 = arith.constant 0.00340829091 : f32
    %132 = vector.broadcast %cst_57 : f32 to vector<16x128xf32>
    %133 = arith.addf %131, %132 : vector<16x128xf32>
    %134 = arith.mulf %133, %129 : vector<16x128xf32>
    %cst_58 = arith.constant 0.0509556942 : f32
    %135 = vector.broadcast %cst_58 : f32 to vector<16x128xf32>
    %136 = arith.addf %134, %135 : vector<16x128xf32>
    %137 = arith.mulf %136, %129 : vector<16x128xf32>
    %cst_59 = arith.constant 0.185208321 : f32
    %138 = vector.broadcast %cst_59 : f32 to vector<16x128xf32>
    %139 = arith.addf %137, %138 : vector<16x128xf32>
    %140 = arith.mulf %139, %129 : vector<16x128xf32>
    %cst_60 = arith.constant 1.12837911 : f32
    %141 = vector.broadcast %cst_60 : f32 to vector<16x128xf32>
    %142 = arith.addf %140, %141 : vector<16x128xf32>
    %cst_61 = arith.constant -1.17916031E-7 : f32
    %143 = vector.broadcast %cst_61 : f32 to vector<16x128xf32>
    %144 = arith.mulf %143, %129 : vector<16x128xf32>
    %cst_62 = arith.constant 2.35479656E-5 : f32
    %145 = vector.broadcast %cst_62 : f32 to vector<16x128xf32>
    %146 = arith.addf %144, %145 : vector<16x128xf32>
    %147 = arith.mulf %146, %129 : vector<16x128xf32>
    %cst_63 = arith.constant 0.00101796258 : f32
    %148 = vector.broadcast %cst_63 : f32 to vector<16x128xf32>
    %149 = arith.addf %147, %148 : vector<16x128xf32>
    %150 = arith.mulf %149, %129 : vector<16x128xf32>
    %cst_64 = arith.constant 0.0140704699 : f32
    %151 = vector.broadcast %cst_64 : f32 to vector<16x128xf32>
    %152 = arith.addf %150, %151 : vector<16x128xf32>
    %153 = arith.mulf %152, %129 : vector<16x128xf32>
    %cst_65 = arith.constant 0.110985048 : f32
    %154 = vector.broadcast %cst_65 : f32 to vector<16x128xf32>
    %155 = arith.addf %153, %154 : vector<16x128xf32>
    %156 = arith.mulf %155, %129 : vector<16x128xf32>
    %cst_66 = arith.constant 0.497469246 : f32
    %157 = vector.broadcast %cst_66 : f32 to vector<16x128xf32>
    %158 = arith.addf %156, %157 : vector<16x128xf32>
    %159 = arith.mulf %158, %129 : vector<16x128xf32>
    %cst_67 = arith.constant 1.000000e+00 : f32
    %160 = vector.broadcast %cst_67 : f32 to vector<16x128xf32>
    %161 = arith.addf %159, %160 : vector<16x128xf32>
    %162 = arith.mulf %128, %142 : vector<16x128xf32>
    %163 = arith.divf %162, %161 : vector<16x128xf32>
    %cst_68 = arith.constant 1.000000e+00 : f32
    %164 = vector.broadcast %cst_68 : f32 to vector<16x128xf32>
    %165 = arith.addf %164, %163 : vector<16x128xf32>
    %166 = arith.mulf %122, %165 : vector<16x128xf32>
    %cst_69 = arith.constant dense<0.000000e+00> : vector<16xf32>
    %167 = vector.multi_reduction <add>, %166, %cst_69 [1] : vector<16x128xf32> to vector<16xf32>
    %168 = vector.shape_cast %167 : vector<16xf32> to vector<16x1xf32>
    %cst_70 = arith.constant 1.280000e+02 : f32
    %169 = vector.broadcast %cst_70 : f32 to vector<16x1xf32>
    %170 = arith.divf %168, %169 : vector<16x1xf32>
    %171 = vector.broadcast %170 : vector<16x1xf32> to vector<16x128xf32>
    %172 = arith.subf %166, %171 : vector<16x128xf32>
    %173 = vector.broadcast %170 : vector<16x1xf32> to vector<16x128xf32>
    %174 = arith.subf %166, %173 : vector<16x128xf32>
    %175 = arith.mulf %172, %174 : vector<16x128xf32>
    %cst_71 = arith.constant dense<0.000000e+00> : vector<16xf32>
    %176 = vector.multi_reduction <add>, %175, %cst_71 [1] : vector<16x128xf32> to vector<16xf32>
    %177 = vector.shape_cast %176 : vector<16xf32> to vector<16x1xf32>
    %cst_72 = arith.constant 1.280000e+02 : f32
    %178 = vector.broadcast %cst_72 : f32 to vector<16x1xf32>
    %179 = arith.divf %177, %178 : vector<16x1xf32>
    %180 = vector.broadcast %170 : vector<16x1xf32> to vector<16x128xf32>
    %181 = arith.subf %166, %180 : vector<16x128xf32>
    %cst_73 = arith.constant 9.99999996E-13 : f32
    %182 = vector.broadcast %cst_73 : f32 to vector<16x1xf32>
    %183 = arith.addf %179, %182 : vector<16x1xf32>
    %184 = math.rsqrt %183 : vector<16x1xf32>
    %185 = vector.broadcast %184 : vector<16x1xf32> to vector<16x128xf32>
    %186 = arith.mulf %181, %185 : vector<16x128xf32>
    %c0_74 = arith.constant 0 : index
    %c0_75 = arith.constant 0 : index
    %187 = vector.load %arg11[%c0_74, %c0_75] : memref<1x128xf32, #tpu.memory_space<vmem>>, vector<1x128xf32>
    %188 = vector.broadcast %187 : vector<1x128xf32> to vector<16x128xf32>
    %189 = arith.mulf %186, %188 : vector<16x128xf32>
    %c0_76 = arith.constant 0 : index
    %c0_77 = arith.constant 0 : index
    %190 = vector.load %arg12[%c0_76, %c0_77] : memref<1x128xf32, #tpu.memory_space<vmem>>, vector<1x128xf32>
    %191 = vector.broadcast %190 : vector<1x128xf32> to vector<16x128xf32>
    %192 = arith.addf %189, %191 : vector<16x128xf32>
    %193 = arith.truncf %192 : vector<16x128xf32> to vector<16x128xbf16>
    %c0_78 = arith.constant 0 : index
    %c0_79 = arith.constant 0 : index
    %194 = vector.load %arg13[%c0_78, %c0_79] : memref<128x768xbf16, #tpu.memory_space<vmem>>, vector<128x768xbf16>
    %cst_80 = arith.constant dense<0.000000e+00> : vector<16x768xf32>
    %195 = tpu.matmul %193, %194, %cst_80 {dimension_numbers = #tpu.dot_dimension_numbers<[1], [0], [0], [1], [0, 0, 1, 1], [], []>} : vector<16x128xbf16>, vector<128x768xbf16>, vector<16x768xf32> -> vector<16x768xf32>
    %c0_81 = arith.constant 0 : index
    %c0_82 = arith.constant 0 : index
    %196 = vector.load %arg14[%c0_81, %c0_82] : memref<1x768xf32, #tpu.memory_space<vmem>>, vector<1x768xf32>
    %197 = vector.broadcast %196 : vector<1x768xf32> to vector<16x768xf32>
    %198 = arith.addf %195, %197 : vector<16x768xf32>
    %199 = arith.truncf %198 : vector<16x768xf32> to vector<16x768xbf16>
    %c0_83 = arith.constant 0 : index
    %c0_84 = arith.constant 0 : index
    %200 = vector.load %arg15[%c0_83, %c0_84] : memref<16x768xbf16, #tpu.memory_space<vmem>>, vector<16x768xbf16>
    %cst_85 = arith.constant dense<0.000000e+00> : vector<16x16xf32>
    %201 = tpu.matmul %199, %200, %cst_85 {dimension_numbers = #tpu.dot_dimension_numbers<[1], [1], [0], [0], [0, 0, 1, 0], [], []>} : vector<16x768xbf16>, vector<16x768xbf16>, vector<16x16xf32> -> vector<16x16xf32>
    %c0_86 = arith.constant 0 : index
    %c0_87 = arith.constant 0 : index
    %202 = vector.load %arg16[%c0_86, %c0_87] : memref<16x1xf32, #tpu.memory_space<vmem>>, vector<16x1xf32>
    %c0_88 = arith.constant 0 : index
    %c0_89 = arith.constant 0 : index
    %203 = vector.load %arg17[%c0_88, %c0_89] : memref<1x16xf32, #tpu.memory_space<vmem>>, vector<1x16xf32>
    %204 = vector.broadcast %202 : vector<16x1xf32> to vector<16x16xf32>
    %205 = vector.broadcast %203 : vector<1x16xf32> to vector<16x16xf32>
    %206 = arith.mulf %204, %205 : vector<16x16xf32>
    %cst_90 = arith.constant 1.000000e+00 : f32
    %207 = vector.broadcast %cst_90 : f32 to vector<16x16xf32>
    %208 = arith.subf %207, %206 : vector<16x16xf32>
    %cst_91 = arith.constant -1.000000e+02 : f32
    %209 = vector.broadcast %cst_91 : f32 to vector<16x16xf32>
    %210 = arith.mulf %208, %209 : vector<16x16xf32>
    %211 = arith.addf %201, %210 : vector<16x16xf32>
    %cst_92 = arith.constant dense<0xFF800000> : vector<16xf32>
    %212 = vector.multi_reduction <maximumf>, %211, %cst_92 [1] : vector<16x16xf32> to vector<16xf32>
    %213 = vector.shape_cast %212 : vector<16xf32> to vector<16x1xf32>
    %214 = vector.broadcast %213 : vector<16x1xf32> to vector<16x16xf32>
    %215 = arith.subf %211, %214 : vector<16x16xf32>
    %216 = math.exp %215 : vector<16x16xf32>
    %cst_93 = arith.constant dense<0.000000e+00> : vector<16xf32>
    %217 = vector.multi_reduction <add>, %216, %cst_93 [1] : vector<16x16xf32> to vector<16xf32>
    %218 = vector.shape_cast %217 : vector<16xf32> to vector<16x1xf32>
    %219 = math.log %218 : vector<16x1xf32>
    %220 = arith.addf %213, %219 : vector<16x1xf32>
    %221 = arith.extf %199 : vector<16x768xbf16> to vector<16x768xf32>
    %222 = arith.extf %200 : vector<16x768xbf16> to vector<16x768xf32>
    %223 = arith.mulf %221, %222 : vector<16x768xf32>
    %cst_94 = arith.constant dense<0.000000e+00> : vector<16xf32>
    %224 = vector.multi_reduction <add>, %223, %cst_94 [1] : vector<16x768xf32> to vector<16xf32>
    %225 = vector.shape_cast %224 : vector<16xf32> to vector<16x1xf32>
    %226 = arith.mulf %202, %202 : vector<16x1xf32>
    %cst_95 = arith.constant 1.000000e+00 : f32
    %227 = vector.broadcast %cst_95 : f32 to vector<16x1xf32>
    %228 = arith.subf %227, %226 : vector<16x1xf32>
    %cst_96 = arith.constant -1.000000e+02 : f32
    %229 = vector.broadcast %cst_96 : f32 to vector<16x1xf32>
    %230 = arith.mulf %228, %229 : vector<16x1xf32>
    %231 = arith.addf %225, %230 : vector<16x1xf32>
    %232 = arith.subf %220, %231 : vector<16x1xf32>
    %c0_97 = arith.constant 0 : index
    %c0_98 = arith.constant 0 : index
    %233 = vector.load %arg18[%c0_97, %c0_98] : memref<16x1xf32, #tpu.memory_space<vmem>>, vector<16x1xf32>
    %234 = arith.mulf %232, %233 : vector<16x1xf32>
    %cst_99 = arith.constant dense<0.000000e+00> : vector<1xf32>
    %235 = vector.multi_reduction <add>, %234, %cst_99 [0] : vector<16x1xf32> to vector<1xf32>
    %236 = vector.shape_cast %235 : vector<1xf32> to vector<1x1xf32>
    %cst_100 = arith.constant dense<0.000000e+00> : vector<1xf32>
    %237 = vector.multi_reduction <add>, %233, %cst_100 [0] : vector<16x1xf32> to vector<1xf32>
    %238 = vector.shape_cast %237 : vector<1xf32> to vector<1x1xf32>
    %cst_101 = arith.constant 1.000000e+00 : f32
    %239 = vector.broadcast %cst_101 : f32 to vector<1x1xf32>
    %240 = arith.maximumf %238, %239 : vector<1x1xf32>
    %241 = tpu.reciprocal %240 {approx = true} : vector<1x1xf32> -> vector<1x1xf32>
    %242 = arith.mulf %236, %241 : vector<1x1xf32>
    %c0_102 = arith.constant 0 : index
    %c0_103 = arith.constant 0 : index
    %243 = vector.load %arg19[%c0_102, %c0_103] : memref<2x128xf32, #tpu.memory_space<vmem>>, vector<2x128xf32>
    %c0_104 = arith.constant 0 : index
    %c0_105 = arith.constant 0 : index
    %244 = vector.load %arg20[%c0_104, %c0_105] : memref<1x128xf32, #tpu.memory_space<vmem>>, vector<1x128xf32>
    %245 = vector.broadcast %244 : vector<1x128xf32> to vector<2x128xf32>
    %246 = arith.mulf %243, %245 : vector<2x128xf32>
    %cst_106 = arith.constant dense<0.000000e+00> : vector<2xf32>
    %247 = vector.multi_reduction <add>, %246, %cst_106 [1] : vector<2x128xf32> to vector<2xf32>
    %248 = vector.shape_cast %247 : vector<2xf32> to vector<2x1xf32>
    %c0_107 = arith.constant 0 : index
    %c0_108 = arith.constant 0 : index
    %249 = vector.load %arg21[%c0_107, %c0_108] : memref<1x1xf32, #tpu.memory_space<vmem>>, vector<1x1xf32>
    %250 = vector.broadcast %249 : vector<1x1xf32> to vector<2x1xf32>
    %251 = arith.addf %248, %250 : vector<2x1xf32>
    %c0_109 = arith.constant 0 : index
    %c0_110 = arith.constant 0 : index
    %252 = vector.load %arg23[%c0_109, %c0_110] : memref<2x1xf32, #tpu.memory_space<vmem>>, vector<2x1xf32>
    tpu.vector_store %arg23[%c0_109, %c0_110], %251 {strides = array<i32>} : memref<2x1xf32, #tpu.memory_space<vmem>>, vector<2x1xf32>,
    %c0_111 = arith.constant 0 : index
    %c0_112 = arith.constant 0 : index
    %253 = vector.load %arg22[%c0_111, %c0_112] : memref<2x1xf32, #tpu.memory_space<vmem>>, vector<2x1xf32>
    %cst_113 = arith.constant 0.000000e+00 : f32
    %254 = vector.broadcast %cst_113 : f32 to vector<2x1xf32>
    %255 = arith.maximumf %251, %254 : vector<2x1xf32>
    %256 = arith.mulf %251, %253 : vector<2x1xf32>
    %257 = arith.subf %255, %256 : vector<2x1xf32>
    %258 = math.absf %251 : vector<2x1xf32>
    %cst_114 = arith.constant 0.000000e+00 : f32
    %259 = vector.broadcast %cst_114 : f32 to vector<2x1xf32>
    %260 = arith.subf %259, %258 : vector<2x1xf32>
    %261 = math.exp %260 : vector<2x1xf32>
    %cst_115 = arith.constant 1.000000e+00 : f32
    %262 = vector.broadcast %cst_115 : f32 to vector<2x1xf32>
    %263 = arith.addf %262, %261 : vector<2x1xf32>
    %264 = math.log %263 : vector<2x1xf32>
    %265 = arith.addf %257, %264 : vector<2x1xf32>
    %cst_116 = arith.constant dense<0.000000e+00> : vector<1xf32>
    %266 = vector.multi_reduction <add>, %265, %cst_116 [0] : vector<2x1xf32> to vector<1xf32>
    %267 = vector.shape_cast %266 : vector<1xf32> to vector<1x1xf32>
    %cst_117 = arith.constant 5.000000e-01 : f32
    %268 = vector.broadcast %cst_117 : f32 to vector<1x1xf32>
    %269 = arith.mulf %267, %268 : vector<1x1xf32>
    %cst_118 = arith.constant 5.000000e-01 : f32
    %270 = vector.broadcast %cst_118 : f32 to vector<1x1xf32>
    %271 = arith.mulf %114, %270 : vector<1x1xf32>
    %cst_119 = arith.constant 0.333333343 : f32
    %272 = vector.broadcast %cst_119 : f32 to vector<1x1xf32>
    %273 = arith.mulf %242, %272 : vector<1x1xf32>
    %274 = arith.addf %271, %273 : vector<1x1xf32>
    %cst_120 = arith.constant 2.000000e+00 : f32
    %275 = vector.broadcast %cst_120 : f32 to vector<1x1xf32>
    %276 = arith.mulf %269, %275 : vector<1x1xf32>
    %277 = arith.addf %274, %276 : vector<1x1xf32>
    %278 = tpu.iota {dimensions = array<i32: 1>} : vector<1x4xi32>
    %c0_i32 = arith.constant 0 : i32
    %279 = vector.broadcast %c0_i32 : i32 to vector<1x4xi32>
    %280 = arith.cmpi eq, %278, %279 : vector<1x4xi32>
    %cst_121 = arith.constant 0.000000e+00 : f32
    %281 = vector.shape_cast %277 : vector<1x1xf32> to vector<1x1xf32>
    %282 = vector.broadcast %281 : vector<1x1xf32> to vector<1x4xf32>
    %283 = vector.broadcast %cst_121 : f32 to vector<1x4xf32>
    %284 = arith.select %280, %282, %283 : vector<1x4xi1>, vector<1x4xf32>
    %c1_i32 = arith.constant 1 : i32
    %285 = vector.broadcast %c1_i32 : i32 to vector<1x4xi32>
    %286 = arith.cmpi eq, %278, %285 : vector<1x4xi32>
    %cst_122 = arith.constant 0.000000e+00 : f32
    %287 = vector.shape_cast %269 : vector<1x1xf32> to vector<1x1xf32>
    %288 = vector.broadcast %287 : vector<1x1xf32> to vector<1x4xf32>
    %289 = vector.broadcast %cst_122 : f32 to vector<1x4xf32>
    %290 = arith.select %286, %288, %289 : vector<1x4xi1>, vector<1x4xf32>
    %291 = arith.addf %284, %290 : vector<1x4xf32>
    %c2_i32 = arith.constant 2 : i32
    %292 = vector.broadcast %c2_i32 : i32 to vector<1x4xi32>
    %293 = arith.cmpi eq, %278, %292 : vector<1x4xi32>
    %cst_123 = arith.constant 0.000000e+00 : f32
    %294 = vector.shape_cast %242 : vector<1x1xf32> to vector<1x1xf32>
    %295 = vector.broadcast %294 : vector<1x1xf32> to vector<1x4xf32>
    %296 = vector.broadcast %cst_123 : f32 to vector<1x4xf32>
    %297 = arith.select %293, %295, %296 : vector<1x4xi1>, vector<1x4xf32>
    %298 = arith.addf %291, %297 : vector<1x4xf32>
    %c3_i32 = arith.constant 3 : i32
    %299 = vector.broadcast %c3_i32 : i32 to vector<1x4xi32>
    %300 = arith.cmpi eq, %278, %299 : vector<1x4xi32>
    %cst_124 = arith.constant 0.000000e+00 : f32
    %301 = vector.shape_cast %114 : vector<1x1xf32> to vector<1x1xf32>
    %302 = vector.broadcast %301 : vector<1x1xf32> to vector<1x4xf32>
    %303 = vector.broadcast %cst_124 : f32 to vector<1x4xf32>
    %304 = arith.select %300, %302, %303 : vector<1x4xi1>, vector<1x4xf32>
    %305 = arith.addf %298, %304 : vector<1x4xf32>
    %c0_125 = arith.constant 0 : index
    %c0_126 = arith.constant 0 : index
    %306 = vector.load %arg24[%c0_125, %c0_126] : memref<1x4xf32, #tpu.memory_space<vmem>>, vector<1x4xf32>
    tpu.vector_store %arg24[%c0_125, %c0_126], %305 {strides = array<i32>} : memref<1x4xf32, #tpu.memory_space<vmem>>, vector<1x4xf32>,
    return
  }
}

</mosaic_0001>

<bundles_post_ra>
// kernel: qq_uni_forward.1
= control target key start
LH: loop header
LB: loop body
LE: loop exit
PB: predicated region body
PF: predicated region fallthrough
CT: control target
= control target key end

     0   :  { %v2169_v0 = vmov 0.0   ;;  %vm2170_vm0 = vmmov 0   ;;  %vm1582_vm5 = vcmask 130048   ;;  %vm1701_vm6 = vcmask 1041408   ;;  %s2936_s1 = inlined_call_operand.vmem [shape: bf16[128,128], index: 1, kind: input, shape index: {}]   ;;  %s2937_s0 = inlined_call_operand.vmem [shape: bf16[16,128], index: 0, kind: input, shape index: {}]   ;;  %s2938_s2 = inlined_call_operand.vmem [shape: f32[1,128], index: 2, kind: input, shape index: {}]   ;;  %s2939_s5 = inlined_call_operand.vmem [shape: bf16[128,512], index: 5, kind: input, shape index: {}]   ;;  %s2940_s9 = inlined_call_operand.vmem [shape: bf16[128,128], index: 9, kind: input, shape index: {}]   ;;  %s2941_s8 = inlined_call_operand.vmem [shape: bf16[16,128], index: 8, kind: input, shape index: {}]   ;;  %s2942_s3 = inlined_call_operand.vmem [shape: f32[1,128], index: 3, kind: input, shape index: {}]   ;;  %s2943_s4 = inlined_call_operand.vmem [shape: f32[1,128], index: 4, kind: input, shape index: {}]   ;;  %s2944_s10 = inlined_call_operand.vmem [shape: f32[1,128], index: 10, kind: input, shape index: {}]   ;;  %s2945_s13 = inlined_call_operand.vmem [shape: bf16[128,768], index: 13, kind: input, shape index: {}]   ;;  %s2946_s16 = inlined_call_operand.vmem [shape: f32[16,1], index: 16, kind: input, shape index: {}]   ;;  %s2947_s6 = inlined_call_operand.vmem [shape: f32[1,512], index: 6, kind: input, shape index: {}]   ;;  %s2948_s7 = inlined_call_operand.vmem [shape: s32[16,1], index: 7, kind: input, shape index: {}]   ;;  %s2949_s11 = inlined_call_operand.vmem [shape: f32[1,128], index: 11, kind: input, shape index: {}]   ;;  %s2950_s12 = inlined_call_operand.vmem [shape: f32[1,128], index: 12, kind: input, shape index: {}]   ;;  %s2951_s15 = inlined_call_operand.vmem [shape: bf16[16,768], index: 15, kind: input, shape index: {}]   ;;  %s2952_s14 = inlined_call_operand.vmem [shape: f32[1,768], index: 14, kind: input, shape index: {}]   ;;  %s2953_s17 = inlined_call_operand.vmem [shape: f32[1,16], index: 17, kind: input, shape index: {}]   ;;  %s2954_s21 = inlined_call_operand.<no memory space> [shape: f32[1,1], index: 21, kind: input, shape index: {}]   ;;  %s2955_s19 = inlined_call_operand.vmem [shape: f32[2,128], index: 19, kind: input, shape index: {}]   ;;  %s2956_s20 = inlined_call_operand.vmem [shape: f32[1,128], index: 20, kind: input, shape index: {}]   ;;  %s2957_s23 = inlined_call_operand.vmem [shape: f32[2,1], index: 23, kind: output, shape index: {0}]   ;;  %s2958_s22 = inlined_call_operand.vmem [shape: f32[2,1], index: 22, kind: input, shape index: {}]   ;;  %s2959_s18 = inlined_call_operand.vmem [shape: f32[16,1], index: 18, kind: input, shape index: {}]   ;;  %s2960_s24 = inlined_call_operand.vmem [shape: f32[1,4], index: 24, kind: output, shape index: {1}]  }
   0x1   :  { %2964 = sst [smem:[#allocation3_spill]] %s2936_s1  ;;  %1918 = vmatprep.subr.bf16.mxu0 %v2169_v0  ;;  %1934 = vmatprep.mubr.msk.bf16.mxu0 %vm2170_vm0, %v2169_v0  ;;  %vm1713_vm11 = vcmask 1024   ;;  %vm700_vm14 = vcmask 7168  }
   0x2   :  { %2965 = sst [smem:[#allocation4_spill]] %s2937_s0  ;;  %s2973_s27 = sld [smem:[#allocation3_spill]] }
   0x3   :  { %2966 = sst [smem:[#allocation5_spill]] %s2938_s2  ;;  %s2974_s2 = sld [smem:[#allocation4_spill]] }
   0x4   :  { %2967 = sst [smem:[#allocation6_spill]] %s2939_s5 }
   0x5   :  { %2968 = sst [smem:[#allocation7_spill]] %s2940_s9  ;;  %s2976_s5 = sld [smem:[#allocation6_spill]] }
   0x6   :  { %2969 = sst [smem:[#allocation8_spill]] %s2941_s8  ;;  %s2979_s30 = sld [smem:[#allocation7_spill]] }
   0x7   :  { %2970 = sst [smem:[#allocation9_spill]] %s2942_s3  ;;  %s2980_s9 = sld [smem:[#allocation8_spill]] }
   0x8   :  { %2971 = sst [smem:[#allocation10_spill]] %s2943_s4  ;;  %v1973_v1 = vld [vmem:[%s2973_s27] sm:$0xff]   ;;  %v1974_v2 = vld [vmem:[%s2973_s27 + $0x8] sm:$0xff]   ;;  %v1975_v3 = vld [vmem:[%s2973_s27 + $0x10] sm:$0xff]   ;;  %s2975_s4 = sld [smem:[#allocation5_spill]] }
   0x9   :  { %2972 = sst [smem:[#allocation11_spill]] %s2944_s10  ;;  %1919 = vmatpush3.bf16.msra.mxu0 %v1973_v1  ;;  %v1976_v4 = vld [vmem:[%s2973_s27 + $0x18] sm:$0xff]   ;;  %v1977_v5 = vld [vmem:[%s2973_s27 + $0x20] sm:$0xff]   ;;  %v1978_v6 = vld [vmem:[%s2973_s27 + $0x28] sm:$0xff]   ;;  %s2978_s1 = sld [smem:[#allocation10_spill]] }
   0xa   :  { %1920 = vmatprep.subr.bf16.mxu0 %v2169_v0  ;;  %v1979_v7 = vld [vmem:[%s2973_s27 + $0x30] sm:$0xff]   ;;  %v1980_v8 = vld [vmem:[%s2973_s27 + $0x38] sm:$0xff]   ;;  %v1981_v9 = vld [vmem:[%s2974_s2] sm:$0xff]   ;;  %s2977_s2 = sld [smem:[#allocation9_spill]]  ;;  %s2981_s8 = sld [smem:[#allocation11_spill]] }
   0xd   :  { %1921 = vmatpush3.bf16.msra.mxu0 %v1974_v2 }
   0xe   :  { %1922 = vmatprep.subr.bf16.mxu0 %v2169_v0  ;;  %v1781_v10 = vld [vmem:[%s2975_s4] ss:$0 sm:$0xff] }
  0x11   :  { %1923 = vmatpush3.bf16.msra.mxu0 %v1975_v3 }
  0x12   :  { %1924 = vmatprep.subr.bf16.mxu0 %v2169_v0 }
  0x15   :  { %1925 = vmatpush3.bf16.msra.mxu0 %v1976_v4 }
  0x16   :  { %1926 = vmatprep.subr.bf16.mxu0 %v2169_v0 }
  0x19   :  { %1927 = vmatpush3.bf16.msra.mxu0 %v1977_v5 }
  0x1a   :  { %1928 = vmatprep.subr.bf16.mxu0 %v2169_v0 }
  0x1d   :  { %1929 = vmatpush3.bf16.msra.mxu0 %v1978_v6 }
  0x1e   :  { %1930 = vmatprep.subr.bf16.mxu0 %v2169_v0 }
  0x21   :  { %1931 = vmatpush3.bf16.msra.mxu0 %v1979_v7 }
  0x22   :  { %1932 = vmatprep.subr.bf16.mxu0 %v2169_v0 }
  0x25   :  { %1933 = vmatpush3.bf16.msra.mxu0 %v1980_v8 }
  0x28   :  { %1935 = vmatmul.mubr.bf16.vlgmr.msra.gmra.mrb[0].mxu0 %v1981_v9 }
  0xfb   :  { %v192_v11 = vpop.f32.mrb[0].mxu0 }
  0xfc   :  { %v193_v12 = vadd.f32 %v1781_v10, %v192_v11  ;;  %v1936_v13 = vpop.f32.mrb[1].mxu0 }
  0xfd   :  { %v195_v14 = vpop.f32.mrb[2].mxu0  ;;  %v1982_v13 = vld [vmem:[%s2976_s5 + $0x4] ss:$16 sps:$4 sm:$0xff]  }
  0xfe   :  { %v201_v15 = vmul.f32 0.70710677, %v193_v12  ;;  %v196_v16 = vadd.f32 %v1781_v10, %v195_v14  ;;  %v1937_v17 = vpop.f32.mrb[3].mxu0  ;;  %v199_v5 = vmul.f32 0.5, %v193_v12  ;;  %v1984_v14 = vld [vmem:[%s2976_s5] ss:$16 sps:$4 sm:$0xff]   ;;  %515 = vmatprep.subr.bf16.mxu1 %v1982_v13 }
  0xff   :  { %v1985_v12 = vld [vmem:[%s2976_s5 + $0x8] ss:$16 sps:$4 sm:$0xff]   ;;  %516 = vmatpush1.bf16.msra.mxu1 %v1984_v14  ;;  %v1990_v17 = vld [vmem:[%s2976_s5 + $0x20] ss:$16 sps:$4 sm:$0xff]  }
 0x100   :  { %v1791_v18 = vclamps-f32 %v201_v15, 3.832507  ;;  %v202_v19 = vmul.f32 0.70710677, %v196_v16  ;;  %v200_v10 = vmul.f32 0.5, %v196_v16  ;;  %v2035_v13 = vld [vmem:[%s2979_s30 + $0x28] sm:$0xff]  }
 0x101   :  { %v1987_v15 = vld [vmem:[%s2976_s5 + $0xc] ss:$16 sps:$4 sm:$0xff]   ;;  %v1988_v16 = vld [vmem:[%s2976_s5 + $0x24] ss:$16 sps:$4 sm:$0xff]  }
 0x102   :  { %v207_v20 = vmul.f32 %v1791_v18, %v1791_v18  ;;  %v1792_v21 = vclamps-f32 %v202_v19, 3.832507  ;;  %558 = vmatprep.subr.bf16.mxu0 %v1987_v15  ;;  %517 = vmatprep.subr.bf16.mxu1 %v1988_v16  ;;  %v1993_v19 = vld [vmem:[%s2976_s5 + $0x2c] ss:$16 sps:$4 sm:$0xff]   ;;  %v2036_v14 = vld [vmem:[%s2979_s30 + $0x30] sm:$0xff]   ;;  %v2038_v15 = vld [vmem:[%s2980_s9] sm:$0xff]  }
 0x103   :  { %559 = vmatpush1.bf16.msra.mxu0 %v1985_v12  ;;  %518 = vmatpush1.bf16.msra.mxu1 %v1990_v17  ;;  %v2037_v12 = vld [vmem:[%s2979_s30 + $0x38] sm:$0xff]  }
 0x104   :  { %v208_v22 = vmul.f32 %v1792_v21, %v1792_v21  ;;  %v225_v23 = vmul.f32 -1.1791603e-07, %v207_v20  ;;  %v209_v24 = vmul.f32 0.00022905065, %v207_v20  ;;  %560 = vmatprep.subr.bf16.mxu0 %v1993_v19 }
 0x106   :  { %v227_v25 = vadd.f32 2.3547966e-05, %v225_v23  ;;  %v226_v26 = vmul.f32 -1.1791603e-07, %v208_v22  ;;  %v210_v27 = vmul.f32 0.00022905065, %v208_v22 }
 0x107   :  { %v211_v29 = vadd.f32 0.003408291, %v209_v24 }
 0x108   :  { %v229_v28 = vmul.f32 %v227_v25, %v207_v20  ;;  %v228_v30 = vadd.f32 2.3547966e-05, %v226_v26  ;;  %v212_v33 = vadd.f32 0.003408291, %v210_v27 }
 0x109   :  { %v213_v35 = vmul.f32 %v211_v29, %v207_v20  ;;  %v1996_v29 = vld [vmem:[%s2976_s5 + $0x40] ss:$16 sps:$4 sm:$0xff]  }
 0x10a   :  { %v231_v31 = vadd.f32 0.0010179626, %v229_v28  ;;  %v230_v32 = vmul.f32 %v228_v30, %v208_v22  ;;  %v214_v39 = vmul.f32 %v212_v33, %v208_v22  ;;  %v1994_v28 = vld [vmem:[%s2976_s5 + $0x44] ss:$16 sps:$4 sm:$0xff]   ;;  %v1999_v30 = vld [vmem:[%s2976_s5 + $0x4c] ss:$16 sps:$4 sm:$0xff]  }
 0x10b   :  { %v215_v41 = vadd.f32 0.050955694, %v213_v35  ;;  %519 = vmatprep.subr.bf16.mxu1 %v1994_v28  ;;  %v2002_v33 = vld [vmem:[%s2976_s5 + $0x60] ss:$16 sps:$4 sm:$0xff]   ;;  %v2003_v35 = vld [vmem:[%s2976_s5 + $0x68] ss:$16 sps:$4 sm:$0xff]  }
 0x10c   :  { %v233_v34 = vmul.f32 %v231_v31, %v207_v20  ;;  %v232_v36 = vadd.f32 0.0010179626, %v230_v32  ;;  %v216_v45 = vadd.f32 0.050955694, %v214_v39  ;;  %v1997_v31 = vld [vmem:[%s2976_s5 + $0x48] ss:$16 sps:$4 sm:$0xff]   ;;  %520 = vmatpush1.bf16.msra.mxu1 %v1996_v29 }
 0x10d   :  { %v217_v47 = vmul.f32 %v215_v41, %v207_v20  ;;  %v2000_v32 = vld [vmem:[%s2976_s5 + $0x64] ss:$16 sps:$4 sm:$0xff]   ;;  %v2011_v39 = vld [vmem:[%s2976_s5 + $0x8c] ss:$16 sps:$4 sm:$0xff]  }
 0x10e   :  { %v235_v37 = vadd.f32 0.01407047, %v233_v34  ;;  %v234_v38 = vmul.f32 %v232_v36, %v208_v22  ;;  %v218_v51 = vmul.f32 %v216_v45, %v208_v22  ;;  %v2005_v34 = vld [vmem:[%s2976_s5 + $0x6c] ss:$16 sps:$4 sm:$0xff]   ;;  %521 = vmatprep.subr.bf16.mxu1 %v2000_v32  ;;  %v2006_v36 = vld [vmem:[%s2976_s5 + $0x84] ss:$16 sps:$4 sm:$0xff]  }
 0x10f   :  { %v219_v53 = vadd.f32 0.18520832, %v217_v47  ;;  %v2017_v41 = vld [vmem:[%s2976_s5 + $0xac] ss:$16 sps:$4 sm:$0xff]   ;;  %v2020_v47 = vld [vmem:[%s2976_s5 + $0xc0] ss:$16 sps:$4 sm:$0xff]  }
 0x110   :  { %v237_v40 = vmul.f32 %v235_v37, %v207_v20  ;;  %v236_v42 = vadd.f32 0.01407047, %v234_v38  ;;  %v220_v57 = vadd.f32 0.18520832, %v218_v51  ;;  %522 = vmatpush1.bf16.msra.mxu1 %v2002_v33  ;;  %v2008_v37 = vld [vmem:[%s2976_s5 + $0x80] ss:$16 sps:$4 sm:$0xff]  }
 0x111   :  { %v221_v58 = vmul.f32 %v219_v53, %v207_v20  ;;  %v2009_v38 = vld [vmem:[%s2976_s5 + $0x88] ss:$16 sps:$4 sm:$0xff]   ;;  %523 = vmatprep.subr.bf16.mxu1 %v2006_v36  ;;  %v2023_v45 = vld [vmem:[%s2976_s5 + $0xcc] ss:$16 sps:$4 sm:$0xff]   ;;  %v2026_v51 = vld [vmem:[%s2976_s5 + $0xe0] ss:$16 sps:$4 sm:$0xff]  }
 0x112   :  { %v239_v43 = vadd.f32 0.11098505, %v237_v40  ;;  %v238_v44 = vmul.f32 %v236_v42, %v208_v22  ;;  %v222_v60 = vmul.f32 %v220_v57, %v208_v22  ;;  %v2012_v40 = vld [vmem:[%s2976_s5 + $0xa4] ss:$16 sps:$4 sm:$0xff]   ;;  %v2014_v42 = vld [vmem:[%s2976_s5 + $0xa0] ss:$16 sps:$4 sm:$0xff]  }
 0x113   :  { %v223_v61 = vadd.f32 1.1283791, %v221_v58 }
 0x114   :  { %v241_v46 = vmul.f32 %v239_v43, %v207_v20  ;;  %v240_v48 = vadd.f32 0.11098505, %v238_v44  ;;  %v224_v62 = vadd.f32 1.1283791, %v222_v60  ;;  %524 = vmatpush1.bf16.msra.mxu1 %v2008_v37  ;;  %v2015_v43 = vld [vmem:[%s2976_s5 + $0xa8] ss:$16 sps:$4 sm:$0xff]  }
 0x115   :  { %v249_v63 = vmul.f32 %v1791_v18, %v223_v61  ;;  %v1991_v18 = vld [vmem:[%s2976_s5 + $0x28] ss:$16 sps:$4 sm:$0xff]   ;;  %525 = vmatprep.subr.bf16.mxu1 %v2012_v40  ;;  %v2018_v44 = vld [vmem:[%s2976_s5 + $0xc4] ss:$16 sps:$4 sm:$0xff]   ;;  %v1793_v61 = vld [vmem:[%s2977_s2] ss:$0 sm:$0xff] }
 0x116   :  { %v243_v49 = vadd.f32 0.49746925, %v241_v46  ;;  %v242_v50 = vmul.f32 %v240_v48, %v208_v22  ;;  %v250_v3 = vmul.f32 %v1792_v21, %v224_v62  ;;  %561 = vmatpush1.bf16.msra.mxu0 %v1991_v18  ;;  %v2171_v46 = vmov 0   ;;  %v2021_v48 = vld [vmem:[%s2976_s5 + $0xc8] ss:$16 sps:$4 sm:$0xff]  }
 0x117   :  { %562 = vmatprep.subr.bf16.mxu0 %v1999_v30  ;;  %547 = vmatprep.mubr.bf16.mxu1 %v2171_v46 }
 0x118   :  { %v245_v52 = vmul.f32 %v243_v49, %v207_v20  ;;  %v244_v54 = vadd.f32 0.49746925, %v242_v50  ;;  %590 = vmatprep.mubr.bf16.mxu0 %v2171_v46  ;;  %1972 = vset.pattern.permute.xlu1 %v2171_v46  ;;  %v2024_v49 = vld [vmem:[%s2976_s5 + $0xe4] ss:$16 sps:$4 sm:$0xff]   ;;  %v2029_v50 = vld [vmem:[%s2976_s5 + $0xec] ss:$16 sps:$4 sm:$0xff]  }
 0x119   :  { %526 = vmatpush1.bf16.msra.mxu1 %v2014_v42  ;;  %1971 = vset.pattern.permute.xlu0 %v2171_v46 }
 0x11a   :  { %v247_v55 = vadd.f32 1.0, %v245_v52  ;;  %v246_v56 = vmul.f32 %v244_v54, %v208_v22  ;;  %563 = vmatpush1.bf16.msra.mxu0 %v1997_v31  ;;  %527 = vmatprep.subr.bf16.mxu1 %v2018_v44  ;;  %v2027_v52 = vld [vmem:[%s2976_s5 + $0xe8] ss:$16 sps:$4 sm:$0xff]  }
 0x11b   :  { %564 = vmatprep.subr.bf16.mxu0 %v2005_v34 }
 0x11c   :  { %2117 = vrcp.f32 %v247_v55  ;;  %v248_v59 = vadd.f32 1.0, %v246_v56 }
 0x11d   :  { %528 = vmatpush1.bf16.msra.mxu1 %v2020_v47 }
 0x11e   :  { %2119 = vrcp.f32 %v248_v59  ;;  %565 = vmatpush1.bf16.msra.mxu0 %v2003_v35  ;;  %529 = vmatprep.subr.bf16.mxu1 %v2024_v49 }
 0x11f   :  { %566 = vmatprep.subr.bf16.mxu0 %v2011_v39 }
 0x121   :  { %530 = vmatpush1.bf16.msra.mxu1 %v2026_v51 }
 0x122   :  { %567 = vmatpush1.bf16.msra.mxu0 %v2009_v38  ;;  %1938 = vmatprep.subr.bf16.mxu1 %v2169_v0 }
 0x123   :  { %568 = vmatprep.subr.bf16.mxu0 %v2017_v41 }
 0x126   :  { %v2118_v1 = vpop.eup %2117  ;;  %569 = vmatpush1.bf16.msra.mxu0 %v2015_v43 }
 0x127   :  { %v252_v2 = vmul.f32 %v2118_v1, %v249_v63  ;;  %570 = vmatprep.subr.bf16.mxu0 %v2023_v45 }
 0x128   :  { %v2120_v4 = vpop.eup %2119 }
 0x129   :  { %v255_v6 = vadd.f32 1.0, %v252_v2  ;;  %v254_v7 = vmul.f32 %v2120_v4, %v250_v3  ;;  %v1794_v2 = vld [vmem:[%s2978_s1] ss:$0 sm:$0xff] }
 0x12a   :  { %571 = vmatpush1.bf16.msra.mxu0 %v2021_v48 }
 0x12b   :  { %v257_v8 = vmul.f32 %v255_v6, %v199_v5  ;;  %v256_v9 = vadd.f32 1.0, %v254_v7  ;;  %572 = vmatprep.subr.bf16.mxu0 %v2029_v50  ;;  %v2030_v6 = vld [vmem:[%s2979_s30] sm:$0xff]  }
 0x12d   :  { %259 = vadd.xlane.f32.xlu0 %v257_v8  ;;  %v258_v11 = vmul.f32 %v256_v9, %v200_v10  ;;  %v2032_v9 = vld [vmem:[%s2979_s30 + $0x10] sm:$0xff]   ;;  %v2033_v10 = vld [vmem:[%s2979_s30 + $0x18] sm:$0xff]  }
 0x12e   :  { %573 = vmatpush1.bf16.msra.mxu0 %v2027_v52 }
 0x131   :  { %261 = vadd.xlane.f32.xlu0 %v258_v11 }
 0x1ba   :  { %v260_v20 = vpop.xlane.xlu0 %259 }
 0x1bb   :  { %v264_v21 = vmul.f32 0.0078125, %v260_v20 }
 0x1bd   :  { %v2361_v22 = vsub.f32 %v257_v8, %v264_v21  ;;  %v2031_v8 = vld [vmem:[%s2979_s30 + $0x8] sm:$0xff]  }
 0x1be   :  { %v262_v23 = vpop.xlane.xlu0 %261 }
 0x1bf   :  { %v265_v24 = vmul.f32 0.0078125, %v262_v23  ;;  %v268_v25 = vmul.f32 %v2361_v22, %v2361_v22 }
 0x1c1   :  { %v2365_v26 = vsub.f32 %v258_v11, %v265_v24  ;;  %270 = vadd.xlane.f32.xlu1 %v268_v25  ;;  %v2034_v11 = vld [vmem:[%s2979_s30 + $0x20] sm:$0xff]  }
 0x1c2   :  { %v1829_v24 = vld [vmem:[%s2981_s8] ss:$0 sm:$0xff] }
 0x1c3   :  { %v269_v27 = vmul.f32 %v2365_v26, %v2365_v26 }
 0x1c5   :  { %272 = vadd.xlane.f32.xlu1 %v269_v27 }
 0x24e   :  { %v271_v53 = vpop.xlane.xlu1 %270 }
 0x24f   :  { %v274_v54 = vmul.f32 0.0078125, %v271_v53 }
 0x251   :  { %v276_v55 = vadd.f32 1e-12, %v274_v54 }
 0x252   :  { %v273_v56 = vpop.xlane.xlu1 %272 }
 0x253   :  { %2121 = vrsqrt.f32 %v276_v55  ;;  %v275_v57 = vmul.f32 0.0078125, %v273_v56 }
 0x255   :  { %v277_v58 = vadd.f32 1e-12, %v275_v57 }
 0x257   :  { %2123 = vrsqrt.f32 %v277_v58 }
 0x25d   :  { %v2122_v59 = vpop.eup %2121 }
 0x25e   :  { %v280_v60 = vmul.f32 %v2122_v59, %v2361_v22 }
 0x260   :  { %v289_v1 = vmul.f32 %v1793_v61, %v280_v60 }
 0x261   :  { %v2124_v62 = vpop.eup %2123 }
 0x262   :  { %v281_v63 = vmul.f32 %v2124_v62, %v2365_v26  ;;  %v298_v4 = vadd.f32 %v1794_v2, %v289_v1 }
 0x264   :  { %v290_v3 = vmul.f32 %v1793_v61, %v281_v63 }
 0x266   :  { %v299_v5 = vadd.f32 %v1794_v2, %v290_v3 }
 0x268   :  { %v300_v7 = vpack.c.bf16 %v299_v5, %v298_v4 }
 0x26a   :  { %548 = vmatmul.mubr.bf16.vlgmr.msra.gmra.mrb[0].mxu1 %v300_v7  ;;  %591 = vmatmul.mubr.bf16.vlgmr.msra.gmra.mrb[4].mxu0 %v300_v7 }
 0x26b   :  { %1939 = vmatpush3.bf16.msra.mxu1 %v2030_v6  ;;  %1954 = vmatprep.mubr.msk.bf16.mxu1 %vm2170_vm0, %v2169_v0 }
 0x26c   :  { %1940 = vmatprep.subr.bf16.mxu1 %v2169_v0  ;;  %1295 = vmatprep.mubr.bf16.mxu0 %v2171_v46 }
 0x26f   :  { %1941 = vmatpush3.bf16.msra.mxu1 %v2031_v8 }
 0x270   :  { %1942 = vmatprep.subr.bf16.mxu1 %v2169_v0 }
 0x273   :  { %1943 = vmatpush3.bf16.msra.mxu1 %v2032_v9 }
 0x274   :  { %1944 = vmatprep.subr.bf16.mxu1 %v2169_v0 }
 0x277   :  { %1945 = vmatpush3.bf16.msra.mxu1 %v2033_v10 }
 0x278   :  { %1946 = vmatprep.subr.bf16.mxu1 %v2169_v0 }
 0x27b   :  { %1947 = vmatpush3.bf16.msra.mxu1 %v2034_v11 }
 0x27c   :  { %1948 = vmatprep.subr.bf16.mxu1 %v2169_v0 }
 0x27f   :  { %1949 = vmatpush3.bf16.msra.mxu1 %v2035_v13 }
 0x280   :  { %1950 = vmatprep.subr.bf16.mxu1 %v2169_v0 }
 0x283   :  { %1951 = vmatpush3.bf16.msra.mxu1 %v2036_v14 }
 0x284   :  { %1952 = vmatprep.subr.bf16.mxu1 %v2169_v0 }
 0x287   :  { %1953 = vmatpush3.bf16.msra.mxu1 %v2037_v12 }
 0x28a   :  { %1955 = vmatmul.mubr.bf16.vlgmr.msra.gmra.mrb[4].mxu1 %v2038_v15 }
 0x28b   :  { %1338 = vmatprep.mubr.bf16.mxu1 %v2171_v46 }
 0x33d   :  { %v2492_v16 = vpop.f32.mrb[0].mxu1  ;;  %v2494_v17 = vpop.f32.mrb[4].mxu0 }
 0x33e   :  { %v2496_v18 = vpop.f32.mrb[1].mxu1  ;;  %v2498_v19 = vpop.f32.mrb[5].mxu0 }
 0x33f   :  { %v2500_v20 = vpop.f32.mrb[2].mxu1  ;;  %v2502_v21 = vpop.f32.mrb[6].mxu0 }
 0x340   :  { %v2504_v22 = vpop.f32.mrb[3].mxu1  ;;  %v2506_v23 = vpop.f32.mrb[7].mxu0 }
 0x35d   :  { %v835_v25 = vpop.f32.mrb[4].mxu1 }
 0x35e   :  { %v836_v26 = vadd.f32 %v1829_v24, %v835_v25  ;;  %v1956_v27 = vpop.f32.mrb[5].mxu1 }
 0x35f   :  { %v838_v28 = vpop.f32.mrb[6].mxu1 }
 0x360   :  { %v844_v29 = vmul.f32 0.70710677, %v836_v26  ;;  %v839_v30 = vadd.f32 %v1829_v24, %v838_v28  ;;  %v1957_v31 = vpop.f32.mrb[7].mxu1 }
 0x362   :  { %v1839_v32 = vclamps-f32 %v844_v29, 3.832507  ;;  %v845_v33 = vmul.f32 0.70710677, %v839_v30  ;;  %v842_v29 = vmul.f32 0.5, %v836_v26 }
 0x363   :  { %v2042_v26 = vld [vmem:[%s2945_s13 + $0x8] ss:$24 sps:$4 sm:$0xff]  }
 0x364   :  { %v850_v34 = vmul.f32 %v1839_v32, %v1839_v32  ;;  %v1840_v35 = vclamps-f32 %v845_v33, 3.832507 }
 0x366   :  { %v851_v36 = vmul.f32 %v1840_v35, %v1840_v35  ;;  %v868_v37 = vmul.f32 -1.1791603e-07, %v850_v34  ;;  %v852_v38 = vmul.f32 0.00022905065, %v850_v34 }
 0x368   :  { %v870_v39 = vadd.f32 2.3547966e-05, %v868_v37  ;;  %v869_v40 = vmul.f32 -1.1791603e-07, %v851_v36  ;;  %v853_v41 = vmul.f32 0.00022905065, %v851_v36 }
 0x369   :  { %v854_v43 = vadd.f32 0.003408291, %v852_v38  ;;  %v843_v38 = vmul.f32 0.5, %v839_v30  ;;  %v2044_v30 = vld [vmem:[%s2945_s13 + $0xc] ss:$24 sps:$4 sm:$0xff]  }
 0x36a   :  { %v872_v42 = vmul.f32 %v870_v39, %v850_v34  ;;  %v871_v44 = vadd.f32 2.3547966e-05, %v869_v40  ;;  %v855_v48 = vadd.f32 0.003408291, %v853_v41  ;;  %1306 = vmatprep.subr.bf16.mxu1 %v2044_v30  ;;  %v2048_v41 = vld [vmem:[%s2945_s13 + $0x38] ss:$24 sps:$4 sm:$0xff]  }
 0x36b   :  { %v856_v50 = vmul.f32 %v854_v43, %v850_v34  ;;  %1307 = vmatpush1.bf16.msra.mxu1 %v2042_v26 }
 0x36c   :  { %v874_v45 = vadd.f32 0.0010179626, %v872_v42  ;;  %v873_v47 = vmul.f32 %v871_v44, %v851_v36  ;;  %v857_v54 = vmul.f32 %v855_v48, %v851_v36  ;;  %v2050_v42 = vld [vmem:[%s2945_s13 + $0x3c] ss:$24 sps:$4 sm:$0xff]  }
 0x36d   :  { %v858_v56 = vadd.f32 0.050955694, %v856_v50  ;;  %1308 = vmatprep.subr.bf16.mxu1 %v2050_v42 }
 0x36e   :  { %v876_v49 = vmul.f32 %v874_v45, %v850_v34  ;;  %v875_v51 = vadd.f32 0.0010179626, %v873_v47  ;;  %v859_v60 = vadd.f32 0.050955694, %v857_v54  ;;  %v2056_v54 = vld [vmem:[%s2945_s13 + $0x6c] ss:$24 sps:$4 sm:$0xff]  }
 0x36f   :  { %v860_v62 = vmul.f32 %v858_v56, %v850_v34  ;;  %1309 = vmatpush1.bf16.msra.mxu1 %v2048_v41  ;;  %v2558_v56 = vld [vmem:[%s2946_s16 + $0x8] sm:$0xff] }
 0x370   :  { %v878_v52 = vadd.f32 0.01407047, %v876_v49  ;;  %v877_v53 = vmul.f32 %v875_v51, %v851_v36  ;;  %v861_v3 = vmul.f32 %v859_v60, %v851_v36  ;;  %1310 = vmatprep.subr.bf16.mxu1 %v2056_v54  ;;  %v2572_v60 = vld [vmem:[%s2946_s16] sm:$0xff] }
 0x371   :  { %v862_v5 = vadd.f32 0.18520832, %v860_v62  ;;  %v2065_v62 = vld [vmem:[%s2945_s13 + $0xc4] ss:$24 sps:$4 sm:$0xff]  }
 0x372   :  { %v880_v55 = vmul.f32 %v878_v52, %v850_v34  ;;  %v879_v57 = vadd.f32 0.01407047, %v877_v53  ;;  %v863_v9 = vadd.f32 0.18520832, %v861_v3  ;;  %v2053_v52 = vld [vmem:[%s2945_s13 + $0x64] ss:$24 sps:$4 sm:$0xff]  }
 0x373   :  { %v864_v10 = vmul.f32 %v862_v5, %v850_v34  ;;  %v2051_v53 = vld [vmem:[%s2945_s13 + $0x60] ss:$24 sps:$4 sm:$0xff]   ;;  %v2071_v3 = vld [vmem:[%s2945_s13 + $0xf4] ss:$24 sps:$4 sm:$0xff]  }
 0x374   :  { %v882_v58 = vadd.f32 0.11098505, %v880_v55  ;;  %v881_v59 = vmul.f32 %v879_v57, %v851_v36  ;;  %v865_v13 = vmul.f32 %v863_v9, %v851_v36  ;;  %v2054_v55 = vld [vmem:[%s2945_s13 + $0x68] ss:$24 sps:$4 sm:$0xff]   ;;  %v2059_v57 = vld [vmem:[%s2945_s13 + $0x94] ss:$24 sps:$4 sm:$0xff]  }
 0x375   :  { %v866_v14 = vadd.f32 1.1283791, %v864_v10  ;;  %1311 = vmatpush1.bf16.msra.mxu1 %v2054_v55  ;;  %v2074_v5 = vld [vmem:[%s2945_s13 + $0xfc] ss:$24 sps:$4 sm:$0xff]   ;;  %v2075_v9 = vld [vmem:[%s2945_s13 + $0x120] ss:$24 sps:$4 sm:$0xff]  }
 0x376   :  { %v884_v61 = vmul.f32 %v882_v58, %v850_v34  ;;  %v883_v63 = vadd.f32 0.11098505, %v881_v59  ;;  %v867_v12 = vadd.f32 1.1283791, %v865_v13  ;;  %v2057_v58 = vld [vmem:[%s2945_s13 + $0x90] ss:$24 sps:$4 sm:$0xff]  }
 0x377   :  { %v892_v15 = vmul.f32 %v1839_v32, %v866_v14  ;;  %v2041_v32 = vld [vmem:[%s2945_s13 + $0x4] ss:$24 sps:$4 sm:$0xff]   ;;  %v2081_v13 = vld [vmem:[%s2945_s13 + $0x150] ss:$24 sps:$4 sm:$0xff]   ;;  %v2083_v14 = vld [vmem:[%s2945_s13 + $0x154] ss:$24 sps:$4 sm:$0xff]  }
 0x378   :  { %v886_v1 = vadd.f32 0.49746925, %v884_v61  ;;  %v885_v2 = vmul.f32 %v883_v63, %v851_v36  ;;  %v893_v27 = vmul.f32 %v1840_v35, %v867_v12  ;;  %1263 = vmatprep.subr.bf16.mxu0 %v2041_v32  ;;  %v2045_v35 = vld [vmem:[%s2945_s13 + $0x30] ss:$24 sps:$4 sm:$0xff]   ;;  %v2062_v59 = vld [vmem:[%s2945_s13 + $0x9c] ss:$24 sps:$4 sm:$0xff]  }
 0x379   :  { %v2060_v61 = vld [vmem:[%s2945_s13 + $0x98] ss:$24 sps:$4 sm:$0xff]   ;;  %1312 = vmatprep.subr.bf16.mxu1 %v2062_v59  ;;  %v2080_v10 = vld [vmem:[%s2945_s13 + $0x12c] ss:$24 sps:$4 sm:$0xff]  }
 0x37a   :  { %v888_v4 = vmul.f32 %v886_v1, %v850_v34  ;;  %v887_v6 = vadd.f32 0.49746925, %v885_v2  ;;  %v2039_v34 = vld [vmem:[%s2945_s13] ss:$24 sps:$4 sm:$0xff]   ;;  %1313 = vmatpush1.bf16.msra.mxu1 %v2060_v61  ;;  %v2068_v1 = vld [vmem:[%s2945_s13 + $0xcc] ss:$24 sps:$4 sm:$0xff]  }
 0x37b   :  { %1264 = vmatpush1.bf16.msra.mxu0 %v2039_v34  ;;  %v2063_v63 = vld [vmem:[%s2945_s13 + $0xc0] ss:$24 sps:$4 sm:$0xff]   ;;  %1314 = vmatprep.subr.bf16.mxu1 %v2068_v1  ;;  %v2092_v1 = vld [vmem:[%s2945_s13 + $0x44] ss:$24 sps:$4 sm:$0xff]  }
 0x37c   :  { %v890_v7 = vadd.f32 1.0, %v888_v4  ;;  %v889_v8 = vmul.f32 %v887_v6, %v851_v36  ;;  %v2047_v36 = vld [vmem:[%s2945_s13 + $0x34] ss:$24 sps:$4 sm:$0xff]   ;;  %v2066_v2 = vld [vmem:[%s2945_s13 + $0xc8] ss:$24 sps:$4 sm:$0xff]  }
 0x37d   :  { %1265 = vmatprep.subr.bf16.mxu0 %v2047_v36  ;;  %v2069_v4 = vld [vmem:[%s2945_s13 + $0xf0] ss:$24 sps:$4 sm:$0xff]  }
 0x37e   :  { %2125 = vrcp.f32 %v890_v7  ;;  %v891_v11 = vadd.f32 1.0, %v889_v8  ;;  %1315 = vmatpush1.bf16.msra.mxu1 %v2066_v2  ;;  %v2072_v6 = vld [vmem:[%s2945_s13 + $0xf8] ss:$24 sps:$4 sm:$0xff]   ;;  %v335_v7 = vlaneseq  ;;  %v2077_v8 = vld [vmem:[%s2945_s13 + $0x124] ss:$24 sps:$4 sm:$0xff]  }
 0x37f   :  { %1266 = vmatpush1.bf16.msra.mxu0 %v2045_v35  ;;  %1316 = vmatprep.subr.bf16.mxu1 %v2074_v5  ;;  %v2095_v2 = vld [vmem:[%s2945_s13 + $0x74] ss:$24 sps:$4 sm:$0xff]  }
 0x380   :  { %2127 = vrcp.f32 %v891_v11  ;;  %1267 = vmatprep.subr.bf16.mxu0 %v2053_v52  ;;  %v2078_v11 = vld [vmem:[%s2945_s13 + $0x128] ss:$24 sps:$4 sm:$0xff]   ;;  %v2622_v12 = vshrl.u32 %v335_v7, 7  ;;  %v2101_v5 = vld [vmem:[%s2945_s13 + $0xd4] ss:$24 sps:$4 sm:$0xff]  }
 0x382   :  { %1317 = vmatpush1.bf16.msra.mxu1 %v2072_v6  ;;  %v2099_v6 = vld [vmem:[%s2945_s13 + $0xd0] ss:$24 sps:$4 sm:$0xff]  }
 0x383   :  { %1268 = vmatpush1.bf16.msra.mxu0 %v2051_v53  ;;  %1318 = vmatprep.subr.bf16.mxu1 %v2080_v10  ;;  %v1841_v53 = vld [vmem:[%s2949_s11] ss:$0 sm:$0xff]  ;;  %v2107_v10 = vld [vmem:[%s2945_s13 + $0x134] ss:$24 sps:$4 sm:$0xff]  }
 0x384   :  { %1269 = vmatprep.subr.bf16.mxu0 %v2059_v57 }
 0x386   :  { %1319 = vmatpush1.bf16.msra.mxu1 %v2078_v11  ;;  %v2105_v11 = vld [vmem:[%s2945_s13 + $0x130] ss:$24 sps:$4 sm:$0xff]  }
 0x387   :  { %1270 = vmatpush1.bf16.msra.mxu0 %v2057_v58  ;;  %v1842_v58 = vld [vmem:[%s2950_s12] ss:$0 sm:$0xff] }
 0x388   :  { %v2126_v24 = vpop.eup %2125  ;;  %1271 = vmatprep.subr.bf16.mxu0 %v2065_v62 }
 0x389   :  { %v895_v25 = vmul.f32 %v2126_v24, %v892_v15  ;;  %v2086_v15 = vld [vmem:[%s2945_s13 + $0x15c] ss:$24 sps:$4 sm:$0xff]  }
 0x38a   :  { %v2128_v28 = vpop.eup %2127  ;;  %v2089_v24 = vld [vmem:[%s2945_s13 + $0x14] ss:$24 sps:$4 sm:$0xff]   ;;  %1320 = vmatprep.subr.bf16.mxu1 %v2086_v15  ;;  %v2108_v15 = vld [vmem:[%s2945_s13 + $0x160] ss:$24 sps:$4 sm:$0xff]  }
 0x38b   :  { %v898_v31 = vadd.f32 1.0, %v895_v25  ;;  %v897_v33 = vmul.f32 %v2128_v28, %v893_v27  ;;  %1272 = vmatpush1.bf16.msra.mxu0 %v2063_v63  ;;  %v2084_v25 = vld [vmem:[%s2945_s13 + $0x158] ss:$24 sps:$4 sm:$0xff]   ;;  %v337_v27 = vsub.s32 0, %v2622_v12  ;;  %v345_v28 = vsub.s32 2, %v2622_v12 }
 0x38c   :  { %1273 = vmatprep.subr.bf16.mxu0 %v2071_v3  ;;  %1321 = vmatpush1.bf16.msra.mxu1 %v2084_v25  ;;  %v2087_v63 = vld [vmem:[%s2945_s13 + $0x10] ss:$24 sps:$4 sm:$0xff]  }
 0x38d   :  { %v900_v37 = vmul.f32 %v898_v31, %v842_v29  ;;  %v899_v39 = vadd.f32 1.0, %v897_v33  ;;  %v341_v29 = vsub.s32 1, %v2622_v12  ;;  %v349_v31 = vsub.s32 3, %v2622_v12  ;;  %v333_v33 = vld [vmem:[%s2947_s6] sm:$0xf] }
 0x38e   :  { %v2093_v3 = vld [vmem:[%s2945_s13 + $0x70] ss:$24 sps:$4 sm:$0xff]  }
 0x38f   :  { %902 = vadd.xlane.f32.xlu0 %v900_v37  ;;  %v901_v40 = vmul.f32 %v899_v39, %v843_v38  ;;  %1274 = vmatpush1.bf16.msra.mxu0 %v2069_v4  ;;  %v346_v38 = vrot.slane %v333_v33, %v345_v28  ;;  %v342_v39 = vrot.slane %v333_v33, %v341_v29  ;;  %v2098_v4 = vld [vmem:[%s2945_s13 + $0xa4] ss:$24 sps:$4 sm:$0xff]  }
 0x390   :  { %1275 = vmatprep.subr.bf16.mxu0 %v2077_v8  ;;  %v2104_v8 = vld [vmem:[%s2945_s13 + $0x104] ss:$24 sps:$4 sm:$0xff]  }
 0x391   :  { %904 = vadd.xlane.f32.xlu1 %v901_v40  ;;  %v2652_v32 = vadd.f32 %v2502_v21, %v346_v38  ;;  %v2655_v26 = vadd.f32 %v2504_v22, %v342_v39  ;;  %v2664_v36 = vadd.f32 %v2494_v17, %v346_v38  ;;  %v2667_v41 = vadd.f32 %v2496_v18, %v342_v39  ;;  %v2683_v18 = vld [vmem:[%s2948_s7 + $0x8] sm:$0xff] }
 0x392   :  { %vm691_vm13 = vcmp.ne.s32.totalorder %v2683_v18, 4294967196 }
 0x393   :  { %1276 = vmatpush1.bf16.msra.mxu0 %v2075_v9  ;;  %v2102_v9 = vld [vmem:[%s2945_s13 + $0x100] ss:$24 sps:$4 sm:$0xff]  }
 0x394   :  { %1277 = vmatprep.subr.bf16.mxu0 %v2083_v14 }
 0x397   :  { %1278 = vmatpush1.bf16.msra.mxu0 %v2081_v13  ;;  %v2110_v13 = vld [vmem:[%s2945_s13 + $0x164] ss:$24 sps:$4 sm:$0xff]  }
 0x398   :  { %1349 = vmatprep.subr.bf16.mxu0 %v2089_v24 }
 0x41c   :  { %v903_v43 = vpop.xlane.xlu0 %902 }
 0x41d   :  { %v906_v44 = vmul.f32 0.0078125, %v903_v43 }
 0x41e   :  { %v905_v47 = vpop.xlane.xlu1 %904 }
 0x41f   :  { %v2535_v45 = vsub.f32 %v900_v37, %v906_v44  ;;  %v907_v48 = vmul.f32 0.0078125, %v905_v47  ;;  %v338_v37 = vrot.slane %v333_v33, %v337_v27 }
 0x421   :  { %v910_v49 = vmul.f32 %v2535_v45, %v2535_v45  ;;  %v2539_v50 = vsub.f32 %v901_v40, %v907_v48  ;;  %v350_v40 = vrot.slane %v333_v33, %v349_v31  ;;  %v2649_v34 = vadd.f32 %v2500_v20, %v338_v37 }
 0x422   :  { %v2661_v35 = vadd.f32 %v2492_v16, %v338_v37 }
 0x423   :  { %912 = vadd.xlane.f32.xlu0 %v910_v49  ;;  %v911_v51 = vmul.f32 %v2539_v50, %v2539_v50  ;;  %v2658_v30 = vadd.f32 %v2506_v23, %v350_v40  ;;  %v2670_v20 = vadd.f32 %v2498_v19, %v350_v40  ;;  %v608_v21 = vmax.f32 %v2649_v34, %v2652_v32 }
 0x424   :  { %v603_v23 = vmax.f32 %v2661_v35, %v2664_v36 }
 0x425   :  { %914 = vadd.xlane.f32.xlu1 %v911_v51  ;;  %v609_v22 = vmax.f32 %v2655_v26, %v2658_v30  ;;  %v604_v16 = vmax.f32 %v2667_v41, %v2670_v20 }
 0x427   :  { %v610_v17 = vmax.f32 %v608_v21, %v609_v22  ;;  %v605_v42 = vmax.f32 %v603_v23, %v604_v16 }
 0x436   :  { %1414 = vperm.xlu1 %1972, %v2558_v56  }
 0x439   :  { %1409 = vperm.xlu0 %1971, %v2572_v60  }
 0x458   :  { %611 = vmax.xlane.f32.xlu0 %v610_v17 }
 0x45a   :  { %606 = vmax.xlane.f32.xlu1 %v605_v42 }
 0x46e   :  { %662 = vperm.xlu0 %1971, %v2683_v18  }
 0x4b0   :  { %v913_v19 = vpop.xlane.xlu0 %912 }
 0x4b1   :  { %v916_v43 = vmul.f32 0.0078125, %v913_v19 }
 0x4b2   :  { %v915_v47 = vpop.xlane.xlu1 %914 }
 0x4b3   :  { %v918_v44 = vadd.f32 1e-12, %v916_v43  ;;  %v917_v48 = vmul.f32 0.0078125, %v915_v47  ;;  %v2755_v47 = vld [vmem:[%s2951_s15] sm:$0xff] }
 0x4b5   :  { %2129 = vrsqrt.f32 %v918_v44  ;;  %v919_v49 = vadd.f32 1e-12, %v917_v48  ;;  %v2760_v48 = vld [vmem:[%s2951_s15 + $0x18] sm:$0xff] }
 0x4b6   :  { %v2737_v14 = vpop.permute.xlu1 %1414 }
 0x4b7   :  { %2131 = vrsqrt.f32 %v919_v49  ;;  %v1893_v49 = vcombine.high %v2755_v47, %v2760_v48 }
 0x4b9   :  { %1459 = vmatprep.subr.bf16.mxu1 %v1893_v49 }
 0x4bf   :  { %v2130_v51 = vpop.eup %2129 }
 0x4c0   :  { %v922_v52 = vmul.f32 %v2130_v51, %v2535_v45  ;;  %v1892_v51 = vcombine.low %v2755_v47, %v2760_v48 }
 0x4c1   :  { %v2132_v54 = vpop.eup %2131 }
 0x4c2   :  { %v923_v55 = vmul.f32 %v2132_v54, %v2539_v50  ;;  %v931_v57 = vmul.f32 %v1841_v53, %v922_v52  ;;  %v2090_v50 = vld [vmem:[%s2945_s13 + $0x40] ss:$24 sps:$4 sm:$0xff]   ;;  %v2769_v52 = vld [vmem:[%s2951_s15 + $0x8] sm:$0xff] }
 0x4c4   :  { %v932_v59 = vmul.f32 %v1841_v53, %v923_v55  ;;  %v940_v61 = vadd.f32 %v1842_v58, %v931_v57  ;;  %v1402_v53 = vld [vmem:[%s2951_s15 + $0x20] sm:$0xff] }
 0x4c5   :  { %v1895_v54 = vcombine.high %v2769_v52, %v1402_v53  ;;  %v1894_v55 = vcombine.low %v2769_v52, %v1402_v53  ;;  %v2779_v57 = vld [vmem:[%s2952_s14] sm:$0x3f] }
 0x4c6   :  { %v941_v62 = vadd.f32 %v1842_v58, %v932_v59  ;;  %v996_v58 = vrot.slane %v2779_v57, %v337_v27  ;;  %v1004_v59 = vrot.slane %v2779_v57, %v345_v28  ;;  %v1625_v27 = vunpack.c.l.bf16 %v2760_v48 }
 0x4c7   :  { %v1620_v28 = vunpack.c.h.bf16 %v2755_v47 }
 0x4c8   :  { %v942_v45 = vpack.c.bf16 %v941_v62, %v940_v61 }
 0x4ca   :  { %1296 = vmatmul.mubr.bf16.vlgmr.msra.gmra.mrb[8].mxu0 %v942_v45  ;;  %1339 = vmatmul.mubr.bf16.vlgmr.msra.gmra.mrb[8].mxu1 %v942_v45 }
 0x4cb   :  { %1350 = vmatpush1.bf16.msra.mxu0 %v2087_v63  ;;  %1381 = vmatprep.mubr.bf16.mxu0 %v2171_v46  ;;  %v2096_v46 = vld [vmem:[%s2945_s13 + $0xa0] ss:$24 sps:$4 sm:$0xff]   ;;  %v1000_v63 = vrot.slane %v2779_v57, %v341_v29 }
 0x4cc   :  { %1351 = vmatprep.subr.bf16.mxu0 %v2092_v1  ;;  %1460 = vmatpush1.bf16.xpose.msra.mxu1 %v1892_v51 }
 0x4cd   :  { %1500 = vmatprep.subr.bf16.mxu1 %v1895_v54 }
 0x4cf   :  { %1352 = vmatpush1.bf16.msra.mxu0 %v2090_v50 }
 0x4d0   :  { %1353 = vmatprep.subr.bf16.mxu0 %v2095_v2  ;;  %v1619_v2 = vunpack.c.l.bf16 %v2755_v47 }
 0x4d3   :  { %1354 = vmatpush1.bf16.msra.mxu0 %v2093_v3 }
 0x4d4   :  { %1355 = vmatprep.subr.bf16.mxu0 %v2098_v4 }
 0x4d7   :  { %1356 = vmatpush1.bf16.msra.mxu0 %v2096_v46  ;;  %v1626_v46 = vunpack.c.h.bf16 %v2760_v48 }
 0x4d8   :  { %1357 = vmatprep.subr.bf16.mxu0 %v2101_v5  ;;  %v1627_v5 = vunpack.c.l.bf16 %v1402_v53 }
 0x4db   :  { %1358 = vmatpush1.bf16.msra.mxu0 %v2099_v6 }
 0x4dc   :  { %1359 = vmatprep.subr.bf16.mxu0 %v2104_v8 }
 0x4df   :  { %1360 = vmatpush1.bf16.msra.mxu0 %v2102_v9 }
 0x4e0   :  { %1361 = vmatprep.subr.bf16.mxu0 %v2107_v10 }
 0x4e3   :  { %1362 = vmatpush1.bf16.msra.mxu0 %v2105_v11 }
 0x4e4   :  { %1363 = vmatprep.subr.bf16.mxu0 %v2110_v13  ;;  %v2805_v13 = vld [vmem:[%s2951_s15 + $0x28] sm:$0xff] }
 0x4e7   :  { %1364 = vmatpush1.bf16.msra.mxu0 %v2108_v15  ;;  %v2742_v24 = vpop.xlane.xlu1 %606 }
 0x4e8   :  { %v613_v25 = vsub.f32 %v2661_v35, %v2742_v24  ;;  %v614_v33 = vsub.f32 %v2667_v41, %v2742_v24  ;;  %v615_v37 = vsub.f32 %v2664_v36, %v2742_v24  ;;  %v616_v38 = vsub.f32 %v2670_v20, %v2742_v24 }
 0x4ea   :  { %v621_v39 = vmul.f32 1.442695, %v613_v25  ;;  %v623_v40 = vmul.f32 1.442695, %v614_v33  ;;  %1382 = vmatmul.mubr.bf16.vlgmr.msra.gmra.mrb[12].mxu0 %v942_v45  ;;  %v625_v21 = vmul.f32 1.442695, %v615_v37  ;;  %v1008_v45 = vrot.slane %v2779_v57, %v349_v31 }
 0x4eb   :  { %v627_v22 = vmul.f32 1.442695, %v616_v38  ;;  %v2800_v31 = vld [vmem:[%s2951_s15 + $0x10] sm:$0xff] }
 0x4ec   :  { %2133 = vpow2.f32 %v621_v39 }
 0x4ed   :  { %2135 = vpow2.f32 %v623_v40  ;;  %v1628_v40 = vunpack.c.h.bf16 %v1402_v53 }
 0x4ee   :  { %2137 = vpow2.f32 %v625_v21  ;;  %v1621_v21 = vunpack.c.l.bf16 %v2769_v52 }
 0x4ef   :  { %2139 = vpow2.f32 %v627_v22 }
 0x4f6   :  { %v2134_v23 = vpop.eup %2133 }
 0x4f7   :  { %v2136_v16 = vpop.eup %2135 }
 0x4f8   :  { %v637_v17 = vadd.f32 %v2136_v16, %v2134_v23  ;;  %v2138_v42 = vpop.eup %2137  ;;  %v1897_v16 = vcombine.high %v2800_v31, %v2805_v13 }
 0x4f9   :  { %v2140_v43 = vpop.eup %2139 }
 0x4fa   :  { %v638_v19 = vadd.f32 %v2138_v42, %v637_v17  ;;  %v1622_v17 = vunpack.c.h.bf16 %v2769_v52 }
 0x4fc   :  { %v639_v44 = vadd.f32 %v2140_v43, %v638_v19 }
 0x4fe   :  { %640 = vadd.xlane.f32.xlu0 %v639_v44 }
 0x59d   :  { %v1297_v61 = vpop.f32.mrb[8].mxu0  ;;  %v1340_v62 = vpop.f32.mrb[8].mxu1 }
 0x59e   :  { %v1299_v1 = vpop.f32.mrb[9].mxu0  ;;  %v1342_v50 = vpop.f32.mrb[9].mxu1  ;;  %v1298_v6 = vadd.f32 %v1297_v61, %v996_v58  ;;  %v1341_v8 = vadd.f32 %v1340_v62, %v1004_v59 }
 0x59f   :  { %v1301_v3 = vpop.f32.mrb[10].mxu0  ;;  %v1344_v4 = vpop.f32.mrb[10].mxu1  ;;  %v1300_v15 = vadd.f32 %v1299_v1, %v1000_v63  ;;  %v1343_v25 = vadd.f32 %v1342_v50, %v1008_v45 }
 0x5a0   :  { %v1302_v29 = vadd.f32 %v1301_v3, %v996_v58  ;;  %v1345_v9 = vadd.f32 %v1344_v4, %v1004_v59  ;;  %v1303_v10 = vpop.f32.mrb[11].mxu0  ;;  %v1346_v11 = vpop.f32.mrb[11].mxu1 }
 0x5a1   :  { %v1304_v33 = vadd.f32 %v1303_v10, %v1000_v63  ;;  %v1347_v37 = vadd.f32 %v1346_v11, %v1008_v45 }
 0x5a2   :  { %v1392_v38 = vpack.c.bf16 %v1302_v29, %v1298_v6  ;;  %v1394_v39 = vpack.c.bf16 %v1345_v9, %v1341_v8 }
 0x5a3   :  { %v1393_v22 = vpack.c.bf16 %v1304_v33, %v1300_v15  ;;  %v1395_v23 = vpack.c.bf16 %v1347_v37, %v1343_v25 }
 0x5a4   :  { %v1607_v42 = vunpack.c.l.bf16 %v1392_v38  ;;  %v1613_v19 = vunpack.c.h.bf16 %v1392_v38  ;;  %v1609_v43 = vunpack.c.l.bf16 %v1394_v39  ;;  %v1615_v44 = vunpack.c.h.bf16 %v1394_v39 }
 0x5a5   :  { %v1608_v47 = vunpack.c.l.bf16 %v1393_v22  ;;  %v1614_v48 = vunpack.c.h.bf16 %v1393_v22  ;;  %v1610_v49 = vunpack.c.l.bf16 %v1395_v23  ;;  %v1616_v51 = vunpack.c.h.bf16 %v1395_v23  ;;  %1491 = vmatprep.mubr.bf16.mxu1 %v1393_v22 }
 0x5a6   :  { %v1631_v54 = vmul.f32 %v1619_v2, %v1607_v42  ;;  %v1637_v53 = vmul.f32 %v1625_v27, %v1613_v19  ;;  %1492 = vmatmul.mubr.bf16.vlgmr.msra.gmra.mrb[12].mxu1 %v1392_v38  ;;  %v1639_v58 = vmul.f32 %v1627_v5, %v1615_v44  ;;  %v1633_v59 = vmul.f32 %v1621_v21, %v1609_v43  ;;  %v1410_v27 = vpop.permute.xlu0 %1409 }
 0x5a7   :  { %v1632_v61 = vmul.f32 %v1620_v28, %v1608_v47  ;;  %v1638_v62 = vmul.f32 %v1626_v46, %v1614_v48  ;;  %1532 = vmatprep.mubr.bf16.mxu1 %v1395_v23  ;;  %1501 = vmatpush1.bf16.xpose.msra.mxu1 %v1894_v55  ;;  %v1640_v63 = vmul.f32 %v1628_v40, %v1616_v51  ;;  %v2814_v28 = vand.u32 127, %v335_v7 }
 0x5a8   :  { %1541 = vmatprep.subr.bf16.mxu1 %v1897_v16  ;;  %v1634_v52 = vmul.f32 %v1622_v17, %v1610_v49  ;;  %v1896_v2 = vcombine.low %v2800_v31, %v2805_v13  ;;  %v1011_v55 = vsub.s32 4, %v2622_v12  ;;  %v1015_v5 = vsub.s32 5, %v2622_v12 }
 0x5a9   :  { %v1650_v45 = vadd.f32 %v1638_v62, %v1637_v53  ;;  %v1643_v1 = vadd.f32 %v1632_v61, %v1631_v54  ;;  %v2821_v8 = vadd.s32 128, %v2814_v28  ;;  %v1629_v21 = vunpack.c.l.bf16 %v2805_v13 }
 0x5aa   :  { %v2816_v46 = vpop.xlane.xlu0 %611  ;;  %v1012_v9 = vrot.slane %v2779_v57, %v1011_v55  ;;  %v1016_v11 = vrot.slane %v2779_v57, %v1015_v5  ;;  %v1623_v57 = vunpack.c.l.bf16 %v2800_v31  ;;  %v1630_v16 = vunpack.c.h.bf16 %v2805_v13 }
 0x5ab   :  { %v1651_v50 = vadd.f32 %v1650_v45, %v1639_v58  ;;  %v1644_v3 = vadd.f32 %v1643_v1, %v1633_v59  ;;  %v1624_v42 = vunpack.c.h.bf16 %v2800_v31  ;;  %v2837_v47 = vadd.s32 384, %v2814_v28  ;;  %v1891_v1 = vld [vmem:[%s2953_s17] ss:$0 sm:$0xff] }
 0x5ac   :  { %vm1747_vm15 = vcmp.eq.s32.totalorder %v2814_v28, 1  ;;  %vm1740_vm0 = vcmp.eq.s32.totalorder %v2814_v28, 0 }
 0x5ad   :  { %v1652_v4 = vadd.f32 %v1651_v50, %v1640_v63  ;;  %v1645_v6 = vadd.f32 %v1644_v3, %v1634_v52  ;;  %v1423_v50 = vmul.f32 %v1891_v1, %v1410_v27  ;;  %v1424_v3 = vmul.f32 %v1891_v1, %v2737_v14  ;;  %v2854_v14 = vld [vmem:[%s2948_s7] sm:$0xff] }
 0x5ae   :  { %v663_v29 = vpop.permute.xlu0 %662  ;;  %v617_v27 = vsub.f32 %v2649_v34, %v2816_v46  ;;  %vm690_vm12 = vcmp.ne.s32.totalorder %v2854_v14, 4294967196 }
 0x5af   :  { %vm668_vm1 = vcmp.eq.s32.totalorder %v2814_v28, %v663_v29  ;;  %vm669_vm2 = vcmp.eq.s32.totalorder %v2821_v8, %v663_v29  ;;  %vm671_vm4 = vcmp.eq.s32.totalorder %v2837_v47, %v663_v29 }
 0x5b0   :  { %v676_v22 = vsel %vm668_vm1, %v2649_v34, 0.0  ;;  %v677_v17 = vsel %vm669_vm2, %v2655_v26, 0.0  ;;  %v679_v52 = vsel %vm671_vm4, %v2658_v30, 0.0  ;;  %vm1755_vm1 = vcmp.eq.s32.totalorder %v2814_v28, 2 }
 0x5b1   :  { %v685_v51 = vadd.f32 %v677_v17, %v676_v22  ;;  %v30_v22 = vstv %s2954_s21  ;;  %vm1763_vm2 = vcmp.eq.s32.totalorder %v2814_v28, 3 }
 0x5b2   :  { %1533 = vmatmul.mubr.bf16.vlgmr.msra.gmra.mrb[12].mxu1 %v1394_v39  ;;  %v2828_v39 = vadd.s32 256, %v2814_v28  ;;  %31 = vst [vmem:[#allocation2] sm:$0x1] %v30_v22  ;;  %v1828_v22 = vsel %vm691_vm13, 1.0, %v2169_v0  ;;  %v641_v18 = vpop.xlane.xlu0 %640 }
 0x5b3   :  { %1542 = vmatpush1.bf16.xpose.msra.mxu1 %v1896_v2 }
 0x5b4   :  { %vm670_vm3 = vcmp.eq.s32.totalorder %v2828_v39, %v663_v29 }
 0x5b5   :  { %v678_v31 = vsel %vm670_vm3, %v2652_v32, 0.0  ;;  %vm1771_vm3 = vcmask 24576  }
 0x5b6   :  { %v686_v62 = vadd.f32 %v685_v51, %v678_v31 }
 0x5b8   :  { %v687_v45 = vadd.f32 %v686_v62, %v679_v52 }
 0x5bd   :  { %v1383_v10 = vpop.f32.mrb[12].mxu0 }
 0x5be   :  { %v1385_v15 = vpop.f32.mrb[13].mxu0  ;;  %v1384_v25 = vadd.f32 %v1383_v10, %v1012_v9 }
 0x5bf   :  { %v1387_v7 = vpop.f32.mrb[14].mxu0  ;;  %v1386_v38 = vadd.f32 %v1385_v15, %v1016_v11 }
 0x5c0   :  { %v1388_v33 = vadd.f32 %v1387_v7, %v1012_v9  ;;  %v1389_v37 = vpop.f32.mrb[15].mxu0 }
 0x5c1   :  { %v1390_v12 = vadd.f32 %v1389_v37, %v1016_v11  ;;  %v629_v37 = vmul.f32 1.442695, %v617_v27 }
 0x5c2   :  { %v1396_v40 = vpack.c.bf16 %v1388_v33, %v1384_v25  ;;  %v618_v33 = vsub.f32 %v2655_v26, %v2816_v46  ;;  %v1692_v26 = vld [vmem:[%s2955_s19] sm:$0x3] }
 0x5c3   :  { %v1397_v23 = vpack.c.bf16 %v1390_v12, %v1386_v38  ;;  %v619_v12 = vsub.f32 %v2652_v32, %v2816_v46  ;;  %2141 = vpow2.f32 %v629_v37  ;;  %v1898_v32 = vld [vmem:[%s2956_s20] ss:$0 sm:$0xff] }
 0x5c4   :  { %v1611_v19 = vunpack.c.l.bf16 %v1396_v40  ;;  %v1617_v43 = vunpack.c.h.bf16 %v1396_v40  ;;  %v631_v38 = vmul.f32 1.442695, %v618_v33 }
 0x5c5   :  { %1573 = vmatprep.mubr.bf16.mxu1 %v1397_v23  ;;  %v1618_v44 = vunpack.c.h.bf16 %v1397_v23  ;;  %v1612_v48 = vunpack.c.l.bf16 %v1397_v23 }
 0x5c6   :  { %1574 = vmatmul.mubr.bf16.vlgmr.msra.gmra.mrb[12].mxu1 %v1396_v40  ;;  %v1641_v49 = vmul.f32 %v1629_v21, %v1617_v43  ;;  %v1635_v54 = vmul.f32 %v1623_v57, %v1611_v19  ;;  %2143 = vpow2.f32 %v631_v38  ;;  %v620_v40 = vsub.f32 %v2658_v30, %v2816_v46 }
 0x5c7   :  { %v1642_v53 = vmul.f32 %v1630_v16, %v1618_v44  ;;  %v1636_v13 = vmul.f32 %v1624_v42, %v1612_v48  ;;  %v633_v21 = vmul.f32 1.442695, %v619_v12  ;;  %v1700_v30 = vmul.f32 %v1898_v32, %v1692_v26 }
 0x5c8   :  { %v1653_v58 = vadd.f32 %v1652_v4, %v1641_v49  ;;  %v1646_v59 = vadd.f32 %v1645_v6, %v1635_v54  ;;  %v1425_v4 = vsub.f32 1.0, %v1423_v50  ;;  %v1426_v6 = vsub.f32 1.0, %v1424_v3 }
 0x5c9   :  { %2145 = vpow2.f32 %v633_v21  ;;  %v635_v34 = vmul.f32 1.442695, %v620_v40  ;;  %v1702_v42 = vsel %vm1701_vm6, %v1700_v30, 0.0  ;;  %v1827_v21 = vsel %vm690_vm12, 1.0, %v2169_v0 }
 0x5ca   :  { %v1654_v61 = vadd.f32 %v1653_v58, %v1642_v53  ;;  %v2842_v63 = vadd.f32 %v1646_v59, %v1636_v13  ;;  %v1427_v2 = vmul.f32 -100.0, %v1425_v4  ;;  %v1428_v55 = vmul.f32 -100.0, %v1426_v6 }
 0x5cb   :  { %2147 = vpow2.f32 %v635_v34  ;;  %v1667_v34 = vld [vmem:[%s2959_s18] sm:$0xff]  ;;  %v711_v26 = vsel %vm700_vm14, %v1828_v22, 0.0 }
 0x5cc   :  { %1655 = vadd.xlane.f32.xlu0 %v1654_v61  ;;  %v1680_v32 = vsel %vm700_vm14, %v1667_v34, 0.0 }
 0x5cd   :  { %v2142_v57 = vpop.eup %2141 }
 0x5d0   :  { %688 = vadd.xlane.f32.xlu0 %v687_v45  ;;  %v2144_v23 = vpop.eup %2143 }
 0x5d1   :  { %v642_v16 = vadd.f32 %v2144_v23, %v2142_v57  ;;  %v1668_v57 = vld [vmem:[%s2959_s18 + $0x8] sm:$0xff] }
 0x5d2   :  { %v1681_v23 = vsel %vm700_vm14, %v1668_v57, 0.0 }
 0x5d3   :  { %v2146_v17 = vpop.eup %2145  ;;  %v1682_v30 = vadd.f32 %v1681_v23, %v1680_v32 }
 0x5d4   :  { %v643_v19 = vadd.f32 %v2146_v17, %v642_v16 }
 0x5d5   :  { %v2148_v43 = vpop.eup %2147 }
 0x5d6   :  { %v644_v44 = vadd.f32 %v2148_v43, %v643_v19 }
 0x699   :  { %v1575_v5 = vpop.f32.mrb[12].mxu1 }
 0x69a   :  { %v1958_v29 = vadd.f32 %v1575_v5, %v1427_v2  ;;  %v1577_v9 = vpop.f32.mrb[13].mxu1 }
 0x69b   :  { %v1578_v10 = vpop.f32.mrb[14].mxu1 }
 0x69c   :  { %v1959_v11 = vadd.f32 %v1578_v10, %v1428_v55  ;;  %v1580_v15 = vpop.f32.mrb[15].mxu1  ;;  %v1583_v7 = vsel %vm1582_vm5, %v1958_v29, -inf }
 0x69d   :  { %1584 = vmax.xlane.f32.xlu1 %v1583_v7 }
 0x69e   :  { %v1586_v25 = vsel %vm1582_vm5, %v1959_v11, -inf }
 0x6a1   :  { %1587 = vmax.xlane.f32.xlu1 %v1586_v25 }
 0x6b2   :  { %659 = vperm.xlu1 %1972, %v2854_v14   ;;  %v710_v14 = vsel %vm700_vm14, %v1827_v21, 0.0 }
 0x6b3   :  { %v712_v0 = vadd.f32 %v711_v26, %v710_v14 }
 0x6b5   :  { %v713_v16 = vrot.slane %v712_v0, 4 }
 0x6b7   :  { %v714_v43 = vadd.f32 %v713_v16, %v712_v0 }
 0x6d6   :  { %1703 = vadd.xlane.f32.xlu1 %v1702_v42  ;;  %v1683_v42 = vrot.slane %v1682_v30, 4 }
 0x6da   :  { %645 = vadd.xlane.f32.xlu1 %v644_v44 }
 0x72a   :  { %v2874_v48 = vpop.xlane.xlu1 %1584 }
 0x72b   :  { %v1589_v49 = vsub.f32 %v1958_v29, %v2874_v48 }
 0x72d   :  { %v1591_v51 = vmul.f32 1.442695, %v1589_v49  ;;  %v1657_v49 = vmul.f32 %v2572_v60, %v2572_v60 }
 0x72e   :  { %v2877_v54 = vpop.xlane.xlu1 %1587 }
 0x72f   :  { %2149 = vpow2.f32 %v1591_v51  ;;  %v1590_v53 = vsub.f32 %v1959_v11, %v2877_v54  ;;  %v1656_v51 = vpop.xlane.xlu0 %1655 }
 0x731   :  { %v1593_v13 = vmul.f32 1.442695, %v1590_v53  ;;  %v1684_v53 = vadd.f32 %v1683_v42, %v1682_v30 }
 0x732   :  { %v660_v58 = vpop.permute.xlu1 %659 }
 0x733   :  { %2151 = vpow2.f32 %v1593_v13  ;;  %vm664_vm7 = vcmp.eq.s32.totalorder %v2814_v28, %v660_v58  ;;  %vm665_vm8 = vcmp.eq.s32.totalorder %v2821_v8, %v660_v58  ;;  %vm666_vm9 = vcmp.eq.s32.totalorder %v2828_v39, %v660_v58 }
 0x734   :  { %v672_v61 = vsel %vm664_vm7, %v2661_v35, 0.0  ;;  %v673_v62 = vsel %vm665_vm8, %v2667_v41, 0.0  ;;  %v674_v50 = vsel %vm666_vm9, %v2664_v36, 0.0  ;;  %vm667_vm10 = vcmp.eq.s32.totalorder %v2837_v47, %v660_v58  ;;  %v1899_v41 = vld [vmem:[#allocation2] ss:$0 sm:$0xff] }
 0x735   :  { %v680_v45 = vadd.f32 %v673_v62, %v672_v61  ;;  %v675_v3 = vsel %vm667_vm10, %v2670_v20, 0.0  ;;  %v1715_v20 = vld [vmem:[%s2958_s22] sm:$0x3]  ;;  %v1658_v61 = vmul.f32 %v2558_v56, %v2558_v56  ;;  %v1659_v62 = vsub.f32 1.0, %v1657_v49 }
 0x737   :  { %v681_v8 = vadd.f32 %v680_v45, %v674_v50  ;;  %v1661_v60 = vmul.f32 -100.0, %v1659_v62 }
 0x739   :  { %v2150_v59 = vpop.eup %2149  ;;  %v682_v35 = vadd.f32 %v681_v8, %v675_v3 }
 0x73a   :  { %v1595_v31 = vsel %vm1582_vm5, %v2150_v59, 0.0  ;;  %v715_v59 = vrot.slane %v714_v43, 2 }
 0x73b   :  { %1596 = vadd.xlane.f32.xlu1 %v1595_v31 }
 0x73c   :  { %v716_v8 = vadd.f32 %v715_v59, %v714_v43 }
 0x73d   :  { %v2152_v52 = vpop.eup %2151 }
 0x73e   :  { %v1598_v1 = vsel %vm1582_vm5, %v2152_v52, 0.0  ;;  %v1685_v52 = vrot.slane %v1684_v53, 2 }
 0x73f   :  { %1599 = vadd.xlane.f32.xlu1 %v1598_v1  ;;  %v689_v1 = vpop.xlane.xlu0 %688 }
 0x743   :  { %1648 = vadd.xlane.f32.xlu1 %v2842_v63 }
 0x747   :  { %683 = vadd.xlane.f32.xlu1 %v682_v35  ;;  %v1660_v35 = vsub.f32 1.0, %v1658_v61 }
 0x763   :  { %v1704_v4 = vpop.xlane.xlu1 %1703 }
 0x764   :  { %v1712_v6 = vadd.f32 %v1899_v41, %v1704_v4  ;;  %v1686_v41 = vadd.f32 %v1685_v52, %v1684_v53 }
 0x766   :  { %1714 = vst.msk [vmem:[%s2957_s23] sm:$0x3] %vm1713_vm11, %v1712_v6  ;;  %v1719_v39 = vand.u32 2147483647, %v1712_v6  ;;  %v1716_v63 = vmax.f32 %v1712_v6, 0.0  ;;  %v1717_v5 = vmul.f32 %v1715_v20, %v1712_v6  ;;  %v1687_v20 = vrot.slane %v1686_v41, 1 }
 0x767   :  { %v646_v40 = vpop.xlane.xlu1 %645 }
 0x768   :  { %v1720_v36 = vsub.f32 0.0, %v1719_v39  ;;  %v1718_v29 = vsub.f32 %v1716_v63, %v1717_v5 }
 0x76a   :  { %v1721_v2 = vmul.f32 1.442695, %v1720_v36  ;;  %v717_v36 = vrot.slane %v716_v8, 1 }
 0x76c   :  { %2153 = vpow2.f32 %v1721_v2 }
 0x776   :  { %v2154_v47 = vpop.eup %2153 }
 0x777   :  { %v1723_v55 = vadd.f32 1.0, %v2154_v47 }
 0x779   :  { %2155 = vlog2.f32 %v1723_v55  ;;  %v1662_v55 = vmul.f32 -100.0, %v1660_v35 }
 0x77a   :  { %2157 = vlog2.f32 %v646_v40 }
 0x77b   :  { %2159 = vlog2.f32 %v641_v18 }
 0x783   :  { %v2156_v9 = vpop.eup %2155 }
 0x784   :  { %v1725_v10 = vmul.f32 0.6931472, %v2156_v9  ;;  %v2158_v17 = vpop.eup %2157 }
 0x785   :  { %v650_v44 = vmul.f32 0.6931472, %v2158_v17  ;;  %v2160_v13 = vpop.eup %2159 }
 0x786   :  { %v1726_v11 = vadd.f32 %v1725_v10, %v1718_v29  ;;  %v648_v45 = vmul.f32 0.6931472, %v2160_v13 }
 0x787   :  { %v652_v31 = vadd.f32 %v650_v44, %v2816_v46 }
 0x788   :  { %v1727_v15 = vsel %vm1713_vm11, %v1726_v11, 0.0  ;;  %v651_v6 = vadd.f32 %v648_v45, %v2742_v24  ;;  %v718_v11 = vadd.f32 %v717_v36, %v716_v8  ;;  %v1664_v24 = vadd.f32 %v1662_v55, %v1656_v51 }
 0x789   :  { %v1728_v7 = vrot.slane %v1727_v15, 4  ;;  %v697_v3 = vsub.f32 %v652_v31, %v689_v1 }
 0x78a   :  { %v719_v40 = vmax.f32 %v718_v11, 1.0 }
 0x78b   :  { %v1729_v25 = vadd.f32 %v1728_v7, %v1727_v15  ;;  %v699_v2 = vmul.f32 %v1828_v22, %v697_v3 }
 0x78d   :  { %v1730_v27 = vrot.slane %v1729_v25, 2  ;;  %v702_v15 = vsel %vm700_vm14, %v699_v2, 0.0 }
 0x78f   :  { %v1731_v33 = vadd.f32 %v1730_v27, %v1729_v25  ;;  %v1688_v27 = vadd.f32 %v1687_v20, %v1686_v41 }
 0x791   :  { %v1732_v37 = vrot.slane %v1731_v33, 1  ;;  %v1689_v26 = vmax.f32 %v1688_v27, 1.0 }
 0x793   :  { %v1733_v38 = vadd.f32 %v1732_v37, %v1731_v33 }
 0x795   :  { %v2899_v12 = vmul.f32 0.5, %v1733_v38 }
 0x797   :  { %1750 = vperm.xlu0 %1971, %v2899_v12   ;;  %v1738_v59 = vmul.f32 2.0, %v2899_v12 }
 0x7c8   :  { %v1597_v19 = vpop.xlane.xlu1 %1596 }
 0x7c9   :  { %2161 = vlog2.f32 %v1597_v19 }
 0x7cc   :  { %v1600_v58 = vpop.xlane.xlu1 %1599 }
 0x7cd   :  { %2163 = vlog2.f32 %v1600_v58 }
 0x7ce   :  { %2165 = vrcp.f32 %v719_v40 }
 0x7cf   :  { %2167 = vrcp.f32 %v1689_v26 }
 0x7d0   :  { %v1649_v50 = vpop.xlane.xlu1 %1648 }
 0x7d1   :  { %v1663_v63 = vadd.f32 %v1661_v60, %v1649_v50 }
 0x7d3   :  { %v2162_v4 = vpop.eup %2161 }
 0x7d4   :  { %v1602_v39 = vmul.f32 0.6931472, %v2162_v4  ;;  %v684_v46 = vpop.xlane.xlu1 %683 }
 0x7d5   :  { %v696_v47 = vsub.f32 %v651_v6, %v684_v46 }
 0x7d6   :  { %v1605_v56 = vadd.f32 %v1602_v39, %v2874_v48 }
 0x7d7   :  { %v2164_v5 = vpop.eup %2163  ;;  %v698_v29 = vmul.f32 %v1827_v21, %v696_v47 }
 0x7d8   :  { %v1604_v9 = vmul.f32 0.6931472, %v2164_v5  ;;  %v1665_v10 = vsub.f32 %v1605_v56, %v1663_v63  ;;  %v2166_v19 = vpop.eup %2165 }
 0x7d9   :  { %v701_v7 = vsel %vm700_vm14, %v698_v29, 0.0 }
 0x7da   :  { %v1606_v25 = vadd.f32 %v1604_v9, %v2877_v54  ;;  %v703_v33 = vadd.f32 %v702_v15, %v701_v7  ;;  %v1669_v38 = vmul.f32 %v1667_v34, %v1665_v10 }
 0x7dc   :  { %v1666_v37 = vsub.f32 %v1606_v25, %v1664_v24  ;;  %v704_v48 = vrot.slane %v703_v33, 4  ;;  %v1671_v18 = vsel %vm700_vm14, %v1669_v38, 0.0 }
 0x7de   :  { %v1670_v22 = vmul.f32 %v1668_v57, %v1666_v37  ;;  %v705_v14 = vadd.f32 %v704_v48, %v703_v33  ;;  %v2168_v57 = vpop.eup %2167 }
 0x7e0   :  { %v1672_v21 = vsel %vm700_vm14, %v1670_v22, 0.0  ;;  %v706_v32 = vrot.slane %v705_v14, 2 }
 0x7e1   :  { %v1673_v23 = vadd.f32 %v1672_v21, %v1671_v18 }
 0x7e2   :  { %v707_v0 = vadd.f32 %v706_v32, %v705_v14 }
 0x7e3   :  { %v1674_v30 = vrot.slane %v1673_v23, 4 }
 0x7e4   :  { %v708_v16 = vrot.slane %v707_v0, 1 }
 0x7e5   :  { %v1675_v54 = vadd.f32 %v1674_v30, %v1673_v23 }
 0x7e6   :  { %v709_v42 = vadd.f32 %v708_v16, %v707_v0 }
 0x7e7   :  { %v1676_v17 = vrot.slane %v1675_v54, 2 }
 0x7e8   :  { %v721_v49 = vmul.f32 %v2166_v19, %v709_v42 }
 0x7e9   :  { %v1677_v34 = vadd.f32 %v1676_v17, %v1675_v54 }
 0x7ea   :  { %v1735_v13 = vmul.f32 0.5, %v721_v49 }
 0x7eb   :  { %v1678_v43 = vrot.slane %v1677_v34, 1 }
 0x7ed   :  { %v1679_v44 = vadd.f32 %v1678_v43, %v1677_v34 }
 0x7ef   :  { %v1691_v51 = vmul.f32 %v2168_v57, %v1679_v44 }
 0x7f1   :  { %1758 = vperm.xlu1 %1972, %v1691_v51   ;;  %v1736_v53 = vmul.f32 0.33333334, %v1691_v51 }
 0x7f3   :  { %v1737_v58 = vadd.f32 %v1736_v53, %v1735_v13 }
 0x7f5   :  { %v1739_v31 = vadd.f32 %v1738_v59, %v1737_v58 }
 0x7f7   :  { %1743 = vperm.xlu1 %1972, %v1739_v31  }
 0x7fb   :  { %1766 = vperm.xlu1 %1972, %v721_v49  }
 0x816   :  { %v1751_v62 = vpop.permute.xlu0 %1750 }
 0x817   :  { %v1753_v45 = vsel %vm1747_vm15, %v1751_v62, 0.0 }
 0x870   :  { %v1759_v61 = vpop.permute.xlu1 %1758 }
 0x871   :  { %v1761_v8 = vsel %vm1755_vm1, %v1759_v61, 0.0 }
 0x876   :  { %v1744_v52 = vpop.permute.xlu1 %1743 }
 0x877   :  { %v1746_v1 = vsel %vm1740_vm0, %v1744_v52, 0.0 }
 0x878   :  { %v1754_v50 = vadd.f32 %v1753_v45, %v1746_v1 }
 0x87a   :  { %v1762_v3 = vadd.f32 %v1761_v8, %v1754_v50  ;;  %v1767_v12 = vpop.permute.xlu1 %1766 }
 0x87b   :  { %v1769_v35 = vsel %vm1763_vm2, %v1767_v12, 0.0 }
 0x87c   :  { %v1770_v60 = vadd.f32 %v1769_v35, %v1762_v3 }
 0x87e   :  { %1772 = vst.msk [vmem:[%s2960_s24] sm:$0x1] %vm1771_vm3, %v1770_v60 }

</bundles_post_ra>
